<compile_context>
chip_gen: v7x
topology: tpu7x:2x2x1
jax: 0.10.0
libtpu: 0.0.40
codegen_flags: <defaults>
</compile_context>

<pallas_src>
import functools

import numpy as np
import jax
import jax.numpy as jnp
from jax import lax
from jax.experimental import pallas as pl
from jax.experimental.pallas import tpu as pltpu


# Tap ordering shared by the kernel and the weight preparation.
_TAPS = tuple((a, c) for a in (-1, 0, 1) for c in (-1, 0, 1))
_MXU_PREC = jax.lax.Precision.HIGHEST      # exact fp32 contracts (tiny matmuls)


def _dot(a, b):
    return jnp.dot(a, b, preferred_element_type=jnp.float32, precision=_MXU_PREC)


# ----------------------------------------------------------------------------- #
# Fused decoder kernel (G images per grid step; everything lives in VMEM)
# ----------------------------------------------------------------------------- #
def _decoder_kernel(z_ref, w_in_ref, b_in_ref, w3_ref, w1_ref,
                    w1q_ref, b1_ref, w2_ref, m8_ref, b2_ref, out_ref,
                    *, num_res, W):
    L = z_ref.shape[2]                      # packed lane count = G * H * W
    m8 = m8_ref[...]                        # (9, L) per-image boundary masks

    def stack_taps(v):
        # v: (C, L).  Returns (9*C, L): the 9 shifted (zero at image borders)
        # copies stacked along sublanes, ready for one stacked-weight matmul.
        rows = []
        for t, (a, c) in enumerate(_TAPS):
            off = a * W + c
            if off == 0:
                rows.append(v)              # center tap: mask is all-ones
            else:
                shifted = pltpu.roll(v, (-off) % L, axis=1)   # XLU lane rotate
                rows.append(shifted * m8[t:t + 1, :])
        return jnp.concatenate(rows, axis=0)

    # ---- head: Conv2d(embedding_dim -> C0, k=1) + bias -----------------------
    x = _dot(w_in_ref[...], z_ref[0]) + b_in_ref[...]          # (C0, L)

    # ---- residual blocks:  x + Conv1x1(ReLU(Conv3x3(x)))  (bias-free) --------
    for l in range(num_res):
        mid = jnp.maximum(_dot(w3_ref[l], stack_taps(x)), 0.0)  # (C0, L)
        x = x + _dot(w1_ref[l], mid)

    # ---- deconv1: ConvTranspose2d(C0->C1, k=4, s=2, p=1), polyphase ----------
    # Output phases stacked along sublanes: rows [p*C1:(p+1)*C1] hold
    # out2H(2y+py, 2x+px) at small-grid location (y, x);  p = py*2 + px.
    st1 = _dot(w1q_ref[...], stack_taps(x)) + b1_ref[...]       # (4*C1, L)
    st1 = jnp.where(st1 > 0, st1, 0.01 * st1)                   # LeakyReLU(0.01)

    # ---- deconv2: ConvTranspose2d(C1->1, k=4, s=2, p=1) + Tanh ---------------
    # Evaluated in doubly-phase-separated form: the (tap, input-phase) stacked
    # weight w2_ref (16, 9*4*C1) consumes the 9-tap stack of st1 directly.
    out = _dot(w2_ref[...], stack_taps(st1)) + b2_ref[0]        # (16, L)
    out_ref[0] = jnp.tanh(out).astype(out_ref.dtype)


# ----------------------------------------------------------------------------- #
# One-time parameter preparation (all weight reshuffling hoisted off the fwd path)
# ----------------------------------------------------------------------------- #
def _ksub(phase, d):
    # kernel index used by polyphase decomposition of k=4, s=2, p=1 deconv
    return (3 - 2 * d) if phase == 0 else (2 - 2 * d)


def _phase_shift(s, a):
    # Decompose (2*t + s) + a  ->  (new phase, small-grid shift), a in {-1,0,1}.
    if a == 0:
        return s, 0
    return 1 - s, (s if a == 1 else s - 1)


def prepare_params(params, H, W, images_per_step=1):
    f32 = jnp.float32
    w_in = np.asarray(params["w_in"], np.float32)     # (C0, EMB, 1, 1)
    C0, EMB = w_in.shape[0], w_in.shape[1]
    wt1 = np.asarray(params["wt1"], np.float32)       # (C0, C1, 4, 4) torch (Cin,Cout,kh,kw)
    wt2 = np.asarray(params["wt2"], np.float32)       # (C1, 1, 4, 4)
    C1 = wt1.shape[1]
    assert wt1.shape[2:] == (4, 4) and wt2.shape[2:] == (4, 4), \
        "polyphase path is specialized to kernel_size=4, stride=2, padding=1"
    num_res = len(params["res"])
    assert num_res >= 1

    prep = {"H": H, "W": W, "G": images_per_step,
            "C0": C0, "C1": C1, "EMB": EMB, "num_res": num_res}

    prep["w_in"] = jnp.asarray(w_in[:, :, 0, 0], f32)                 # (C0, EMB)
    prep["b_in"] = jnp.asarray(params["b_in"], f32).reshape(C0, 1)

    # Residual-block weights, 3x3 taps stacked along columns.
    w3_stk = np.zeros((num_res, C0, 9 * C0), np.float32)
    w1_stk = np.zeros((num_res, C0, C0), np.float32)
    for l, (w3, w1) in enumerate(params["res"]):
        w3 = np.asarray(w3, np.float32)
        for t, (a, c) in enumerate(_TAPS):
            w3_stk[l, :, t * C0:(t + 1) * C0] = w3[:, :, a + 1, c + 1]
        w1_stk[l] = np.asarray(w1, np.float32)[:, :, 0, 0]
    prep["w3_stk"] = jnp.asarray(w3_stk)
    prep["w1_stk"] = jnp.asarray(w1_stk)

    # deconv1: polyphase sub-kernels stacked over (tap, in-channel) columns,
    # output phases stacked along rows -> one (4*C1, 9*C0) matmul.
    w1q = np.zeros((4 * C1, 9 * C0), np.float32)
    for py in (0, 1):
        for px in (0, 1):
            p = py * 2 + px
            for dy in (0, 1):
                for dx in (0, 1):
                    a, c = dy - (1 - py), dx - (1 - px)
                    t = (a + 1) * 3 + (c + 1)
                    w1q[p * C1:(p + 1) * C1, t * C0:(t + 1) * C0] = \
                        wt1[:, :, _ksub(py, dy), _ksub(px, dx)].T
    prep["w1q"] = jnp.asarray(w1q)
    prep["b1"] = jnp.tile(jnp.asarray(params["bt1"], f32).reshape(C1, 1), (4, 1))

    # deconv2: a shift (a,c) on the 2Hx2W grid decomposes into a phase swap of
    # deconv1's 4 planes plus a small-grid shift.  Stack weights over
    # (small-grid tap u, input plane q) columns; 16 output phase planes as rows.
    w2_stk = np.zeros((16, 9 * 4 * C1), np.float32)
    for sy in (0, 1):
        for sx in (0, 1):
            for py in (0, 1):
                for px in (0, 1):
                    o = sy * 8 + py * 4 + sx * 2 + px
                    for dy in (0, 1):
                        for dx in (0, 1):
                            a, c = dy - (1 - py), dx - (1 - px)
                            fr, dr = _phase_shift(sy, a)
                            fc, dc = _phase_shift(sx, c)
                            u = (dr + 1) * 3 + (dc + 1)
                            q = fr * 2 + fc
                            col = u * 4 * C1 + q * C1
                            w2_stk[o, col:col + C1] += \
                                wt2[:, 0, _ksub(py, dy), _ksub(px, dx)]
    prep["w2_stk"] = jnp.asarray(w2_stk)
    prep["b2"] = jnp.asarray(params["bt2"], f32).reshape(1,)   # scalar, SMEM

    # Per-image boundary masks for the 9 small-grid shifts, tiled across the
    # images packed into the lane axis (they also kill roll wraparound between
    # neighbouring packed images).
    m8 = np.zeros((9, H * W), np.float32)
    for t, (a, c) in enumerate(_TAPS):
        for yy in range(H):
            for xx in range(W):
                if 0 <= yy + a < H and 0 <= xx + c < W:
                    m8[t, yy * W + xx] = 1.0
    prep["m8"] = jnp.asarray(np.tile(m8, (1, images_per_step)))
    return prep


# ----------------------------------------------------------------------------- #
# Decoder forward (single fused pallas_call, grid over batch groups)
# ----------------------------------------------------------------------------- #
def decoder_forward(z_q_nchw, prep):
    B, EMB, H, W = z_q_nchw.shape
    assert (H, W, EMB) == (prep["H"], prep["W"], prep["EMB"]), \
        "prepare_params() was built for a different input geometry"
    G = prep["G"]
    assert B % G == 0, "batch must be divisible by images_per_step"
    steps = B // G
    HW = H * W
    L = G * HW

    # Pack G images into the lane axis: lane = g*HW + y*W + x.
    z = z_q_nchw.astype(jnp.float32).reshape(steps, G, EMB, HW)
    z = z.transpose(0, 2, 1, 3).reshape(steps, EMB, L)

    kernel = functools.partial(_decoder_kernel, num_res=prep["num_res"], W=W)

    def full(arr):
        n = arr.ndim
        return pl.BlockSpec(arr.shape, lambda s, _n=n: (0,) * _n)

    out = pl.pallas_call(
        kernel,
        out_shape=jax.ShapeDtypeStruct((steps, 16, L), jnp.float32),
        grid=(steps,),
        in_specs=[
            pl.BlockSpec((1, EMB, L), lambda s: (s, 0, 0)),     # z (G images/step)
            full(prep["w_in"]), full(prep["b_in"]),
            full(prep["w3_stk"]), full(prep["w1_stk"]),
            full(prep["w1q"]), full(prep["b1"]),
            full(prep["w2_stk"]), full(prep["m8"]),
            pl.BlockSpec(memory_space=pltpu.MemorySpace.SMEM),  # scalar bias b2
        ],
        out_specs=pl.BlockSpec((1, 16, L), lambda s: (s, 0, 0)),
        compiler_params=pltpu.CompilerParams(
            dimension_semantics=("parallel",)),
    )(z, prep["w_in"], prep["b_in"], prep["w3_stk"], prep["w1_stk"],
      prep["w1q"], prep["b1"], prep["w2_stk"], prep["m8"], prep["b2"])

    # Re-interleave the 16 output phase planes (pure layout plumbing, in XLA):
    # out[s, sy*8+py*4+sx*2+px, g*HW + ty*W + tx]
    #   -> image b = s*G+g, pixel (4*ty + 2*sy + py, 4*tx + 2*sx + px)
    out = out.reshape(steps, 2, 2, 2, 2, G, H, W)
    out = out.transpose(0, 5, 6, 1, 2, 7, 3, 4)
    return out.reshape(B, 1, 4 * H, 4 * W)


# ----------------------------------------------------------------------------- #
# Pure-JAX reference (lax convs, NCHW) used only for the correctness check
# ----------------------------------------------------------------------------- #
def _conv_ref(x, w, b, pad, lhs_dilation=1):
    y = lax.conv_general_dilated(
        x, w, window_strides=(1, 1), padding=[(pad, pad), (pad, pad)],
        lhs_dilation=(lhs_dilation, lhs_dilation),
        dimension_numbers=("NCHW", "OIHW", "NCHW"),
        precision=jax.lax.Precision.HIGHEST)
    return y + b.reshape(1, -1, 1, 1)


def decoder_reference(z_q, params):
    x = _conv_ref(z_q, params["w_in"], params["b_in"], 0)
    for w1, w2 in params["res"]:
        h = jnp.maximum(_conv_ref(x, w1, jnp.zeros((w1.shape[0],)), 1), 0.0)
        x = x + _conv_ref(h, w2, jnp.zeros((w2.shape[0],)), 0)

    def conv_t(x, w_io, b, k, s, p):
        w_conv = jnp.transpose(jnp.flip(w_io, (2, 3)), (1, 0, 2, 3))
        return _conv_ref(x, w_conv, b, k - 1 - p, lhs_dilation=s)

    x = conv_t(x, params["wt1"], params["bt1"], 4, 2, 1)
    x = jnp.where(x > 0, x, 0.01 * x)
    x = conv_t(x, params["wt2"], params["bt2"], 4, 2, 1)
    return jnp.tanh(x)


# ----------------------------------------------------------------------------- #
if __name__ == "__main__":
    # Hyperparameters consistent with Decoder.__init__:
    #   channels=[16, 8], kernel_sizes=[4], strides=[2], num_residual_layers=1,
    #   embedding_dim=8, upsampling=[], activation='leaky_relu', dropout_rate=0.0
    B, EMB, H, W = 4, 8, 8, 8
    C0, C1 = 16, 8

    key = jax.random.PRNGKey(0)
    ks = jax.random.split(key, 8)
    params = {
        "w_in": jax.random.normal(ks[0], (C0, EMB, 1, 1), jnp.float32) * 0.1,
        "b_in": jax.random.normal(ks[1], (C0,), jnp.float32) * 0.01,
        "res": [(
            jax.random.normal(ks[2], (C0, C0, 3, 3), jnp.float32) * 0.1,
            jax.random.normal(ks[3], (C0, C0, 1, 1), jnp.float32) * 0.1,
        )],
        "wt1": jax.random.normal(ks[4], (C0, C1, 4, 4), jnp.float32) * 0.1,  # (Cin,Cout,kh,kw)
        "bt1": jax.random.normal(ks[5], (C1,), jnp.float32) * 0.01,
        "wt2": jax.random.normal(ks[6], (C1, 1, 4, 4), jnp.float32) * 0.1,
        "bt2": jax.random.normal(ks[7], (1,), jnp.float32) * 0.01,
    }

    z_q = jax.random.normal(jax.random.PRNGKey(1), (B, EMB, H, W), jnp.float32)

    # 2 images per grid step -> 128 lanes per vreg (lane-dense) and
    # B // 2 = 2 parallel grid steps (both v7x TensorCores get work).
    prep = prepare_params(params, H, W, images_per_step=2)

    fwd = jax.jit(lambda z: decoder_forward(z, prep))
    out = jax.block_until_ready(fwd(z_q))
    assert out.shape == (B, 1, 4 * H, 4 * W), out.shape

    ref = jax.block_until_ready(decoder_reference(z_q, params))
    err = float(jnp.max(jnp.abs(out - ref)))
    # Tight tolerance (fp32 contracts on both sides) so layout drift can't hide.
    assert jnp.allclose(out, ref, atol=1e-5, rtol=1e-5), f"max abs err {err}"

    print("KERNEL_OK")
</pallas_src>

<mosaic_0001>
module attributes {stable_mosaic.version = 11 : i64} {
  func.func @_decoder_kernel(%arg0: i32, %arg1: memref<1x8x128xf32, #tpu.memory_space<vmem>>, %arg2: memref<16x8xf32, #tpu.memory_space<vmem>>, %arg3: memref<16x1xf32, #tpu.memory_space<vmem>>, %arg4: memref<1x16x144xf32, #tpu.memory_space<vmem>>, %arg5: memref<1x16x16xf32, #tpu.memory_space<vmem>>, %arg6: memref<32x144xf32, #tpu.memory_space<vmem>>, %arg7: memref<32x1xf32, #tpu.memory_space<vmem>>, %arg8: memref<16x288xf32, #tpu.memory_space<vmem>>, %arg9: memref<9x128xf32, #tpu.memory_space<vmem>>, %arg10: memref<1xf32, #tpu.memory_space<smem>>, %arg11: memref<1x16x128xf32, #tpu.memory_space<vmem>>) attributes {dimension_semantics = [#tpu.dimension_semantics<parallel>], iteration_bounds = array<i64: 2>, scalar_prefetch = 0 : i64, scratch_operands = 0 : i64, tpu.core_type = #tpu.core_type<tc>, window_params = [{transform_indices = @transform_0, window_bounds = array<i64: 1, 8, 128>}, {pipeline_mode = #tpu.pipeline_mode<synchronous>, transform_indices = @transform_1, window_bounds = array<i64: 16, 8>}, {pipeline_mode = #tpu.pipeline_mode<synchronous>, transform_indices = @transform_2, window_bounds = array<i64: 16, 1>}, {pipeline_mode = #tpu.pipeline_mode<synchronous>, transform_indices = @transform_3, window_bounds = array<i64: 1, 16, 144>}, {pipeline_mode = #tpu.pipeline_mode<synchronous>, transform_indices = @transform_4, window_bounds = array<i64: 1, 16, 16>}, {pipeline_mode = #tpu.pipeline_mode<synchronous>, transform_indices = @transform_5, window_bounds = array<i64: 32, 144>}, {pipeline_mode = #tpu.pipeline_mode<synchronous>, transform_indices = @transform_6, window_bounds = array<i64: 32, 1>}, {pipeline_mode = #tpu.pipeline_mode<synchronous>, transform_indices = @transform_7, window_bounds = array<i64: 16, 288>}, {pipeline_mode = #tpu.pipeline_mode<synchronous>, transform_indices = @transform_8, window_bounds = array<i64: 9, 128>}, {transform_indices = @transform_9, window_bounds = array<i64: 1>}, {transform_indices = @transform_10, window_bounds = array<i64: 1, 16, 128>}]} {
    %c0 = arith.constant 0 : index
    %c0_0 = arith.constant 0 : index
    %0 = vector.load %arg9[%c0, %c0_0] : memref<9x128xf32, #tpu.memory_space<vmem>>, vector<9x128xf32>
    %c0_1 = arith.constant 0 : index
    %c0_2 = arith.constant 0 : index
    %1 = vector.load %arg2[%c0_1, %c0_2] : memref<16x8xf32, #tpu.memory_space<vmem>>, vector<16x8xf32>
    %c0_3 = arith.constant 0 : index
    %c0_4 = arith.constant 0 : index
    %c0_5 = arith.constant 0 : index
    %2 = vector.load %arg1[%c0_3, %c0_4, %c0_5] : memref<1x8x128xf32, #tpu.memory_space<vmem>>, vector<1x8x128xf32>
    %3 = vector.shape_cast %2 : vector<1x8x128xf32> to vector<8x128xf32>
    %cst = arith.constant dense<0.000000e+00> : vector<16x128xf32>
    %4 = tpu.matmul %1, %3, %cst {dimension_numbers = #tpu.dot_dimension_numbers<[1], [0], [0], [1], [0, 0, 1, 1], [], []>, precision = #tpu.contract_precision<fp32>} : vector<16x8xf32>, vector<8x128xf32>, vector<16x128xf32> -> vector<16x128xf32>
    %c0_6 = arith.constant 0 : index
    %c0_7 = arith.constant 0 : index
    %5 = vector.load %arg3[%c0_6, %c0_7] : memref<16x1xf32, #tpu.memory_space<vmem>>, vector<16x1xf32>
    %6 = vector.broadcast %5 : vector<16x1xf32> to vector<16x128xf32>
    %7 = arith.addf %4, %6 : vector<16x128xf32>
    %c0_8 = arith.constant 0 : index
    %c0_9 = arith.constant 0 : index
    %c0_10 = arith.constant 0 : index
    %8 = vector.load %arg4[%c0_8, %c0_9, %c0_10] : memref<1x16x144xf32, #tpu.memory_space<vmem>>, vector<1x16x144xf32>
    %9 = vector.shape_cast %8 : vector<1x16x144xf32> to vector<16x144xf32>
    %c9_i32 = arith.constant 9 : i32
    %10 = tpu.dynamic_rotate %7 by %c9_i32 dim 1 : vector<16x128xf32>, i32 -> vector<16x128xf32>
    %11 = vector.extract_strided_slice %0 {offsets = [0, 0], sizes = [1, 128], strides = [1, 1]} : vector<9x128xf32> to vector<1x128xf32>
    %12 = vector.broadcast %11 : vector<1x128xf32> to vector<16x128xf32>
    %13 = arith.mulf %10, %12 : vector<16x128xf32>
    %c8_i32 = arith.constant 8 : i32
    %14 = tpu.dynamic_rotate %7 by %c8_i32 dim 1 : vector<16x128xf32>, i32 -> vector<16x128xf32>
    %15 = vector.extract_strided_slice %0 {offsets = [1, 0], sizes = [1, 128], strides = [1, 1]} : vector<9x128xf32> to vector<1x128xf32>
    %16 = vector.broadcast %15 : vector<1x128xf32> to vector<16x128xf32>
    %17 = arith.mulf %14, %16 : vector<16x128xf32>
    %c7_i32 = arith.constant 7 : i32
    %18 = tpu.dynamic_rotate %7 by %c7_i32 dim 1 : vector<16x128xf32>, i32 -> vector<16x128xf32>
    %19 = vector.extract_strided_slice %0 {offsets = [2, 0], sizes = [1, 128], strides = [1, 1]} : vector<9x128xf32> to vector<1x128xf32>
    %20 = vector.broadcast %19 : vector<1x128xf32> to vector<16x128xf32>
    %21 = arith.mulf %18, %20 : vector<16x128xf32>
    %c1_i32 = arith.constant 1 : i32
    %22 = tpu.dynamic_rotate %7 by %c1_i32 dim 1 : vector<16x128xf32>, i32 -> vector<16x128xf32>
    %23 = vector.extract_strided_slice %0 {offsets = [3, 0], sizes = [1, 128], strides = [1, 1]} : vector<9x128xf32> to vector<1x128xf32>
    %24 = vector.broadcast %23 : vector<1x128xf32> to vector<16x128xf32>
    %25 = arith.mulf %22, %24 : vector<16x128xf32>
    %c127_i32 = arith.constant 127 : i32
    %26 = tpu.dynamic_rotate %7 by %c127_i32 dim 1 : vector<16x128xf32>, i32 -> vector<16x128xf32>
    %27 = vector.extract_strided_slice %0 {offsets = [5, 0], sizes = [1, 128], strides = [1, 1]} : vector<9x128xf32> to vector<1x128xf32>
    %28 = vector.broadcast %27 : vector<1x128xf32> to vector<16x128xf32>
    %29 = arith.mulf %26, %28 : vector<16x128xf32>
    %c121_i32 = arith.constant 121 : i32
    %30 = tpu.dynamic_rotate %7 by %c121_i32 dim 1 : vector<16x128xf32>, i32 -> vector<16x128xf32>
    %31 = vector.extract_strided_slice %0 {offsets = [6, 0], sizes = [1, 128], strides = [1, 1]} : vector<9x128xf32> to vector<1x128xf32>
    %32 = vector.broadcast %31 : vector<1x128xf32> to vector<16x128xf32>
    %33 = arith.mulf %30, %32 : vector<16x128xf32>
    %c120_i32 = arith.constant 120 : i32
    %34 = tpu.dynamic_rotate %7 by %c120_i32 dim 1 : vector<16x128xf32>, i32 -> vector<16x128xf32>
    %35 = vector.extract_strided_slice %0 {offsets = [7, 0], sizes = [1, 128], strides = [1, 1]} : vector<9x128xf32> to vector<1x128xf32>
    %36 = vector.broadcast %35 : vector<1x128xf32> to vector<16x128xf32>
    %37 = arith.mulf %34, %36 : vector<16x128xf32>
    %c119_i32 = arith.constant 119 : i32
    %38 = tpu.dynamic_rotate %7 by %c119_i32 dim 1 : vector<16x128xf32>, i32 -> vector<16x128xf32>
    %39 = vector.extract_strided_slice %0 {offsets = [8, 0], sizes = [1, 128], strides = [1, 1]} : vector<9x128xf32> to vector<1x128xf32>
    %40 = vector.broadcast %39 : vector<1x128xf32> to vector<16x128xf32>
    %41 = arith.mulf %38, %40 : vector<16x128xf32>
    %42 = tpu.concatenate %13, %17, %21, %25, %7, %29, %33, %37, %41 in 0 : vector<16x128xf32>, vector<16x128xf32>, vector<16x128xf32>, vector<16x128xf32>, vector<16x128xf32>, vector<16x128xf32>, vector<16x128xf32>, vector<16x128xf32>, vector<16x128xf32> -> vector<144x128xf32>
    %cst_11 = arith.constant dense<0.000000e+00> : vector<16x128xf32>
    %43 = tpu.matmul %9, %42, %cst_11 {dimension_numbers = #tpu.dot_dimension_numbers<[1], [0], [0], [1], [0, 0, 1, 1], [], []>, precision = #tpu.contract_precision<fp32>} : vector<16x144xf32>, vector<144x128xf32>, vector<16x128xf32> -> vector<16x128xf32>
    %cst_12 = arith.constant 0.000000e+00 : f32
    %44 = vector.broadcast %cst_12 : f32 to vector<16x128xf32>
    %45 = arith.maximumf %43, %44 : vector<16x128xf32>
    %c0_13 = arith.constant 0 : index
    %c0_14 = arith.constant 0 : index
    %c0_15 = arith.constant 0 : index
    %46 = vector.load %arg5[%c0_13, %c0_14, %c0_15] : memref<1x16x16xf32, #tpu.memory_space<vmem>>, vector<1x16x16xf32>
    %47 = vector.shape_cast %46 : vector<1x16x16xf32> to vector<16x16xf32>
    %cst_16 = arith.constant dense<0.000000e+00> : vector<16x128xf32>
    %48 = tpu.matmul %47, %45, %cst_16 {dimension_numbers = #tpu.dot_dimension_numbers<[1], [0], [0], [1], [0, 0, 1, 1], [], []>, precision = #tpu.contract_precision<fp32>} : vector<16x16xf32>, vector<16x128xf32>, vector<16x128xf32> -> vector<16x128xf32>
    %49 = arith.addf %7, %48 : vector<16x128xf32>
    %c0_17 = arith.constant 0 : index
    %c0_18 = arith.constant 0 : index
    %50 = vector.load %arg6[%c0_17, %c0_18] : memref<32x144xf32, #tpu.memory_space<vmem>>, vector<32x144xf32>
    %c9_i32_19 = arith.constant 9 : i32
    %51 = tpu.dynamic_rotate %49 by %c9_i32_19 dim 1 : vector<16x128xf32>, i32 -> vector<16x128xf32>
    %52 = vector.extract_strided_slice %0 {offsets = [0, 0], sizes = [1, 128], strides = [1, 1]} : vector<9x128xf32> to vector<1x128xf32>
    %53 = vector.broadcast %52 : vector<1x128xf32> to vector<16x128xf32>
    %54 = arith.mulf %51, %53 : vector<16x128xf32>
    %c8_i32_20 = arith.constant 8 : i32
    %55 = tpu.dynamic_rotate %49 by %c8_i32_20 dim 1 : vector<16x128xf32>, i32 -> vector<16x128xf32>
    %56 = vector.extract_strided_slice %0 {offsets = [1, 0], sizes = [1, 128], strides = [1, 1]} : vector<9x128xf32> to vector<1x128xf32>
    %57 = vector.broadcast %56 : vector<1x128xf32> to vector<16x128xf32>
    %58 = arith.mulf %55, %57 : vector<16x128xf32>
    %c7_i32_21 = arith.constant 7 : i32
    %59 = tpu.dynamic_rotate %49 by %c7_i32_21 dim 1 : vector<16x128xf32>, i32 -> vector<16x128xf32>
    %60 = vector.extract_strided_slice %0 {offsets = [2, 0], sizes = [1, 128], strides = [1, 1]} : vector<9x128xf32> to vector<1x128xf32>
    %61 = vector.broadcast %60 : vector<1x128xf32> to vector<16x128xf32>
    %62 = arith.mulf %59, %61 : vector<16x128xf32>
    %c1_i32_22 = arith.constant 1 : i32
    %63 = tpu.dynamic_rotate %49 by %c1_i32_22 dim 1 : vector<16x128xf32>, i32 -> vector<16x128xf32>
    %64 = vector.extract_strided_slice %0 {offsets = [3, 0], sizes = [1, 128], strides = [1, 1]} : vector<9x128xf32> to vector<1x128xf32>
    %65 = vector.broadcast %64 : vector<1x128xf32> to vector<16x128xf32>
    %66 = arith.mulf %63, %65 : vector<16x128xf32>
    %c127_i32_23 = arith.constant 127 : i32
    %67 = tpu.dynamic_rotate %49 by %c127_i32_23 dim 1 : vector<16x128xf32>, i32 -> vector<16x128xf32>
    %68 = vector.extract_strided_slice %0 {offsets = [5, 0], sizes = [1, 128], strides = [1, 1]} : vector<9x128xf32> to vector<1x128xf32>
    %69 = vector.broadcast %68 : vector<1x128xf32> to vector<16x128xf32>
    %70 = arith.mulf %67, %69 : vector<16x128xf32>
    %c121_i32_24 = arith.constant 121 : i32
    %71 = tpu.dynamic_rotate %49 by %c121_i32_24 dim 1 : vector<16x128xf32>, i32 -> vector<16x128xf32>
    %72 = vector.extract_strided_slice %0 {offsets = [6, 0], sizes = [1, 128], strides = [1, 1]} : vector<9x128xf32> to vector<1x128xf32>
    %73 = vector.broadcast %72 : vector<1x128xf32> to vector<16x128xf32>
    %74 = arith.mulf %71, %73 : vector<16x128xf32>
    %c120_i32_25 = arith.constant 120 : i32
    %75 = tpu.dynamic_rotate %49 by %c120_i32_25 dim 1 : vector<16x128xf32>, i32 -> vector<16x128xf32>
    %76 = vector.extract_strided_slice %0 {offsets = [7, 0], sizes = [1, 128], strides = [1, 1]} : vector<9x128xf32> to vector<1x128xf32>
    %77 = vector.broadcast %76 : vector<1x128xf32> to vector<16x128xf32>
    %78 = arith.mulf %75, %77 : vector<16x128xf32>
    %c119_i32_26 = arith.constant 119 : i32
    %79 = tpu.dynamic_rotate %49 by %c119_i32_26 dim 1 : vector<16x128xf32>, i32 -> vector<16x128xf32>
    %80 = vector.extract_strided_slice %0 {offsets = [8, 0], sizes = [1, 128], strides = [1, 1]} : vector<9x128xf32> to vector<1x128xf32>
    %81 = vector.broadcast %80 : vector<1x128xf32> to vector<16x128xf32>
    %82 = arith.mulf %79, %81 : vector<16x128xf32>
    %83 = tpu.concatenate %54, %58, %62, %66, %49, %70, %74, %78, %82 in 0 : vector<16x128xf32>, vector<16x128xf32>, vector<16x128xf32>, vector<16x128xf32>, vector<16x128xf32>, vector<16x128xf32>, vector<16x128xf32>, vector<16x128xf32>, vector<16x128xf32> -> vector<144x128xf32>
    %cst_27 = arith.constant dense<0.000000e+00> : vector<32x128xf32>
    %84 = tpu.matmul %50, %83, %cst_27 {dimension_numbers = #tpu.dot_dimension_numbers<[1], [0], [0], [1], [0, 0, 1, 1], [], []>, precision = #tpu.contract_precision<fp32>} : vector<32x144xf32>, vector<144x128xf32>, vector<32x128xf32> -> vector<32x128xf32>
    %c0_28 = arith.constant 0 : index
    %c0_29 = arith.constant 0 : index
    %85 = vector.load %arg7[%c0_28, %c0_29] : memref<32x1xf32, #tpu.memory_space<vmem>>, vector<32x1xf32>
    %86 = vector.broadcast %85 : vector<32x1xf32> to vector<32x128xf32>
    %87 = arith.addf %84, %86 : vector<32x128xf32>
    %cst_30 = arith.constant 0.000000e+00 : f32
    %88 = vector.broadcast %cst_30 : f32 to vector<32x128xf32>
    %89 = arith.cmpf ogt, %87, %88 : vector<32x128xf32>
    %cst_31 = arith.constant 0.00999999977 : f32
    %90 = vector.broadcast %cst_31 : f32 to vector<32x128xf32>
    %91 = arith.mulf %90, %87 : vector<32x128xf32>
    %92 = arith.select %89, %87, %91 : vector<32x128xi1>, vector<32x128xf32>
    %c0_32 = arith.constant 0 : index
    %c0_33 = arith.constant 0 : index
    %93 = vector.load %arg8[%c0_32, %c0_33] : memref<16x288xf32, #tpu.memory_space<vmem>>, vector<16x288xf32>
    %c9_i32_34 = arith.constant 9 : i32
    %94 = tpu.dynamic_rotate %92 by %c9_i32_34 dim 1 : vector<32x128xf32>, i32 -> vector<32x128xf32>
    %95 = vector.extract_strided_slice %0 {offsets = [0, 0], sizes = [1, 128], strides = [1, 1]} : vector<9x128xf32> to vector<1x128xf32>
    %96 = vector.broadcast %95 : vector<1x128xf32> to vector<32x128xf32>
    %97 = arith.mulf %94, %96 : vector<32x128xf32>
    %c8_i32_35 = arith.constant 8 : i32
    %98 = tpu.dynamic_rotate %92 by %c8_i32_35 dim 1 : vector<32x128xf32>, i32 -> vector<32x128xf32>
    %99 = vector.extract_strided_slice %0 {offsets = [1, 0], sizes = [1, 128], strides = [1, 1]} : vector<9x128xf32> to vector<1x128xf32>
    %100 = vector.broadcast %99 : vector<1x128xf32> to vector<32x128xf32>
    %101 = arith.mulf %98, %100 : vector<32x128xf32>
    %c7_i32_36 = arith.constant 7 : i32
    %102 = tpu.dynamic_rotate %92 by %c7_i32_36 dim 1 : vector<32x128xf32>, i32 -> vector<32x128xf32>
    %103 = vector.extract_strided_slice %0 {offsets = [2, 0], sizes = [1, 128], strides = [1, 1]} : vector<9x128xf32> to vector<1x128xf32>
    %104 = vector.broadcast %103 : vector<1x128xf32> to vector<32x128xf32>
    %105 = arith.mulf %102, %104 : vector<32x128xf32>
    %c1_i32_37 = arith.constant 1 : i32
    %106 = tpu.dynamic_rotate %92 by %c1_i32_37 dim 1 : vector<32x128xf32>, i32 -> vector<32x128xf32>
    %107 = vector.extract_strided_slice %0 {offsets = [3, 0], sizes = [1, 128], strides = [1, 1]} : vector<9x128xf32> to vector<1x128xf32>
    %108 = vector.broadcast %107 : vector<1x128xf32> to vector<32x128xf32>
    %109 = arith.mulf %106, %108 : vector<32x128xf32>
    %c127_i32_38 = arith.constant 127 : i32
    %110 = tpu.dynamic_rotate %92 by %c127_i32_38 dim 1 : vector<32x128xf32>, i32 -> vector<32x128xf32>
    %111 = vector.extract_strided_slice %0 {offsets = [5, 0], sizes = [1, 128], strides = [1, 1]} : vector<9x128xf32> to vector<1x128xf32>
    %112 = vector.broadcast %111 : vector<1x128xf32> to vector<32x128xf32>
    %113 = arith.mulf %110, %112 : vector<32x128xf32>
    %c121_i32_39 = arith.constant 121 : i32
    %114 = tpu.dynamic_rotate %92 by %c121_i32_39 dim 1 : vector<32x128xf32>, i32 -> vector<32x128xf32>
    %115 = vector.extract_strided_slice %0 {offsets = [6, 0], sizes = [1, 128], strides = [1, 1]} : vector<9x128xf32> to vector<1x128xf32>
    %116 = vector.broadcast %115 : vector<1x128xf32> to vector<32x128xf32>
    %117 = arith.mulf %114, %116 : vector<32x128xf32>
    %c120_i32_40 = arith.constant 120 : i32
    %118 = tpu.dynamic_rotate %92 by %c120_i32_40 dim 1 : vector<32x128xf32>, i32 -> vector<32x128xf32>
    %119 = vector.extract_strided_slice %0 {offsets = [7, 0], sizes = [1, 128], strides = [1, 1]} : vector<9x128xf32> to vector<1x128xf32>
    %120 = vector.broadcast %119 : vector<1x128xf32> to vector<32x128xf32>
    %121 = arith.mulf %118, %120 : vector<32x128xf32>
    %c119_i32_41 = arith.constant 119 : i32
    %122 = tpu.dynamic_rotate %92 by %c119_i32_41 dim 1 : vector<32x128xf32>, i32 -> vector<32x128xf32>
    %123 = vector.extract_strided_slice %0 {offsets = [8, 0], sizes = [1, 128], strides = [1, 1]} : vector<9x128xf32> to vector<1x128xf32>
    %124 = vector.broadcast %123 : vector<1x128xf32> to vector<32x128xf32>
    %125 = arith.mulf %122, %124 : vector<32x128xf32>
    %126 = tpu.concatenate %97, %101, %105, %109, %92, %113, %117, %121, %125 in 0 : vector<32x128xf32>, vector<32x128xf32>, vector<32x128xf32>, vector<32x128xf32>, vector<32x128xf32>, vector<32x128xf32>, vector<32x128xf32>, vector<32x128xf32>, vector<32x128xf32> -> vector<288x128xf32>
    %cst_42 = arith.constant dense<0.000000e+00> : vector<16x128xf32>
    %127 = tpu.matmul %93, %126, %cst_42 {dimension_numbers = #tpu.dot_dimension_numbers<[1], [0], [0], [1], [0, 0, 1, 1], [], []>, precision = #tpu.contract_precision<fp32>} : vector<16x288xf32>, vector<288x128xf32>, vector<16x128xf32> -> vector<16x128xf32>
    %c0_43 = arith.constant 0 : index
    %128 = memref.load %arg10[%c0_43] : memref<1xf32, #tpu.memory_space<smem>>
    %129 = vector.broadcast %128 : f32 to vector<16x128xf32>
    %130 = arith.addf %127, %129 : vector<16x128xf32>
    %131 = math.tanh %130 : vector<16x128xf32>
    %c0_44 = arith.constant 0 : index
    %c0_45 = arith.constant 0 : index
    %c0_46 = arith.constant 0 : index
    %132 = vector.load %arg11[%c0_44, %c0_45, %c0_46] : memref<1x16x128xf32, #tpu.memory_space<vmem>>, vector<1x16x128xf32>
    %133 = vector.shape_cast %132 : vector<1x16x128xf32> to vector<16x128xf32>
    %134 = vector.shape_cast %131 : vector<16x128xf32> to vector<1x16x128xf32>
    tpu.vector_store %arg11[%c0_44, %c0_45, %c0_46], %134 {strides = array<i32>} : memref<1x16x128xf32, #tpu.memory_space<vmem>>, vector<1x16x128xf32>,
    return
  }
  func.func @transform_0(%arg0: i32) -> (i32, i32, i32) {
    %c0_i32 = arith.constant 0 : i32
    %c0_i32_0 = arith.constant 0 : i32
    %c0_i32_1 = arith.constant 0 : i32
    return %arg0, %c0_i32, %c0_i32_0 : i32, i32, i32
  }
  func.func @transform_1(%arg0: i32) -> (i32, i32) {
    %c0_i32 = arith.constant 0 : i32
    %c0_i32_0 = arith.constant 0 : i32
    %c0_i32_1 = arith.constant 0 : i32
    return %c0_i32, %c0_i32_0 : i32, i32
  }
  func.func @transform_2(%arg0: i32) -> (i32, i32) {
    %c0_i32 = arith.constant 0 : i32
    %c0_i32_0 = arith.constant 0 : i32
    %c0_i32_1 = arith.constant 0 : i32
    return %c0_i32, %c0_i32_0 : i32, i32
  }
  func.func @transform_3(%arg0: i32) -> (i32, i32, i32) {
    %c0_i32 = arith.constant 0 : i32
    %c0_i32_0 = arith.constant 0 : i32
    %c0_i32_1 = arith.constant 0 : i32
    %c0_i32_2 = arith.constant 0 : i32
    return %c0_i32, %c0_i32_0, %c0_i32_1 : i32, i32, i32
  }
  func.func @transform_4(%arg0: i32) -> (i32, i32, i32) {
    %c0_i32 = arith.constant 0 : i32
    %c0_i32_0 = arith.constant 0 : i32
    %c0_i32_1 = arith.constant 0 : i32
    %c0_i32_2 = arith.constant 0 : i32
    return %c0_i32, %c0_i32_0, %c0_i32_1 : i32, i32, i32
  }
  func.func @transform_5(%arg0: i32) -> (i32, i32) {
    %c0_i32 = arith.constant 0 : i32
    %c0_i32_0 = arith.constant 0 : i32
    %c0_i32_1 = arith.constant 0 : i32
    return %c0_i32, %c0_i32_0 : i32, i32
  }
  func.func @transform_6(%arg0: i32) -> (i32, i32) {
    %c0_i32 = arith.constant 0 : i32
    %c0_i32_0 = arith.constant 0 : i32
    %c0_i32_1 = arith.constant 0 : i32
    return %c0_i32, %c0_i32_0 : i32, i32
  }
  func.func @transform_7(%arg0: i32) -> (i32, i32) {
    %c0_i32 = arith.constant 0 : i32
    %c0_i32_0 = arith.constant 0 : i32
    %c0_i32_1 = arith.constant 0 : i32
    return %c0_i32, %c0_i32_0 : i32, i32
  }
  func.func @transform_8(%arg0: i32) -> (i32, i32) {
    %c0_i32 = arith.constant 0 : i32
    %c0_i32_0 = arith.constant 0 : i32
    %c0_i32_1 = arith.constant 0 : i32
    return %c0_i32, %c0_i32_0 : i32, i32
  }
  func.func @transform_9(%arg0: i32) -> i32 {
    %c0_i32 = arith.constant 0 : i32
    %c0_i32_0 = arith.constant 0 : i32
    return %c0_i32 : i32
  }
  func.func @transform_10(%arg0: i32) -> (i32, i32, i32) {
    %c0_i32 = arith.constant 0 : i32
    %c0_i32_0 = arith.constant 0 : i32
    %c0_i32_1 = arith.constant 0 : i32
    return %arg0, %c0_i32, %c0_i32_0 : i32, i32, i32
  }
}

</mosaic_0001>

<bundles_post_ra>
// kernel: _lambda_.1
= control target key start
LH: loop header
LB: loop body
LE: loop exit
PB: predicated region body
PF: predicated region fallthrough
CT: control target
= control target key end

     0   :  { %s6023_s15 = smov 0   ;;  %s7678_s0 = inlined_call_operand.vmem [shape: f32[2,8,128], index: 0, kind: input, shape index: {}]   ;;  %s7679_s1 = inlined_call_operand.vmem [shape: f32[16,8], index: 1, kind: input, shape index: {}]   ;;  %s7680_s2 = inlined_call_operand.vmem [shape: f32[16,1], index: 2, kind: input, shape index: {}]   ;;  %s7681_s3 = inlined_call_operand.vmem [shape: f32[1,16,144], index: 3, kind: input, shape index: {}]   ;;  %s7682_s4 = inlined_call_operand.vmem [shape: f32[1,16,16], index: 4, kind: input, shape index: {}]   ;;  %s7683_s5 = inlined_call_operand.vmem [shape: f32[32,144], index: 5, kind: input, shape index: {}]   ;;  %s7684_s6 = inlined_call_operand.vmem [shape: f32[32,1], index: 6, kind: input, shape index: {}]   ;;  %s7685_s7 = inlined_call_operand.vmem [shape: f32[16,288], index: 7, kind: input, shape index: {}]   ;;  %s7686_s8 = inlined_call_operand.vmem [shape: f32[9,128], index: 8, kind: input, shape index: {}]   ;;  %s7687_s9 = inlined_call_operand.<no memory space> [shape: f32[1], index: 9, kind: input, shape index: {}]   ;;  %s7688_s10 = inlined_call_operand.vmem [shape: f32[2,16,128], index: 10, kind: output, shape index: {}]  }
   0x1   :  { %15 = sst [smem:[#allocation2]] %s7687_s9 }
   0x2 LB: > { %s4780_s16 = sadd.s32 4294967295, %s5953_s15   ;;  %p4784_p0 = scmp.ge.s32.totalorder %s5953_s15, 1  ;;  %s5953_s15 = sphi %s6023_s15, %s21_s15  }
   0x3   : > { %p312_p1 = scmp.lt.s32.totalorder %s5953_s15, 3 }
   0x5   : > { %p313_p2 = pnand %p4784_p0, %p312_p1 }
   0x7   : > { %316 = sbr.rel (%p313_p2) target bundleno = 2179 (0x883), region = 60 }
   0xe   : > { %p349_p3 = scmp.lt.s32.totalorder %s4780_s16, 1  ;;  %v360_v0 = vld [vmem:[%s7679_s1] sm:$0xff]  ;;  %v361_v1 = vld [vmem:[%s7679_s1 + $0x8] sm:$0xff]  ;;  %vm375_vm0 = vcmask 64512   ;;  %v5955_v5 = vmov 0   ;;  %v7706_v24 = vmov 0.0|0.0   ;;  %v879_v44 = vlaneseq }
   0xf   : > { %v363_v2 = vld [vmem:[%s7680_s2] sm:$0xff]  ;;  %v377_v3 = vsel %vm375_vm0, %v360_v0, 0  ;;  %v380_v4 = vsel %vm375_vm0, %v361_v1, 0  ;;  %5940 = vset.pattern.permute.xlu0 %v5955_v5  ;;  %5941 = vset.pattern.permute.xlu1 %v5955_v5  ;;  %v364_v8 = vld [vmem:[%s7680_s2 + $0x8] sm:$0xff]  ;;  %s5957_s28 = smov 9   ;;  %s5958_s29 = smov 8  }
  0x10   : > { %s7979_s16 = smov (!%p349_p3, %s4780_s16), 1  ;;  %v448_v6 = vand.u32 4294901760, %v377_v3  ;;  %v458_v7 = vand.u32 4294901760, %v380_v4  ;;  %367 = vperm.xlu0 %5940, %v363_v2   ;;  %5236 = vmatprep.subr.bf16.mxu1 %v7706_v24  ;;  %s5959_s30 = smov 7   ;;  %v872_v37 = vld [vmem:[%s7681_s3 + $0x8] sm:$0xff]  ;;  %vm955_vm1 = vcmask 130048  }
  0x11   : > { %s4785_s24 = sshll.u32 %s7979_s16, 3  ;;  %s5960_s11 = smov 1   ;;  %v957_v38 = vsel %vm955_vm1, %v872_v37, 0  ;;  %v6119_v45 = vshrl.u32 %v879_v44, 7  ;;  %v6125_v47 = vld [vmem:[%s7686_s8] sm:$0xff]  ;;  %vm3268_vm6 = vcmask 261120  }
  0x12   : > { %v449_v9 = vsub.f32 %v377_v3, %v448_v6  ;;  %v459_v10 = vsub.f32 %v380_v4, %v458_v7  ;;  %s352_s27 = scalar_lea.vmem %s7678_s0, %s4785_s24  ;;  %s5961_s12 = smov 127   ;;  %v6102_v39 = vand.u32 4294901760, %v957_v38 }
  0x13   : > { %v362_v11 = vld [vmem:[%s352_s27] sm:$0xff]  ;;  %s5962_s13 = smov 121   ;;  %s5963_s18 = smov 120   ;;  %v881_v46 = vsub.s32 0, %v6119_v45  ;;  %v891_v49 = vsub.s32 1, %v6119_v45  ;;  %v901_v54 = vsub.s32 2, %v6119_v45 }
  0x14   : > { %v450_v12 = vand.u32 4294901760, %v449_v9  ;;  %v460_v13 = vand.u32 4294901760, %v459_v10  ;;  %372 = vperm.xlu0 %5940, %v364_v8   ;;  %v383_v14 = vand.u32 4294901760, %v362_v11  ;;  %v6107_v40 = vsub.f32 %v957_v38, %v6102_v39  ;;  %s5964_s9 = smov 119   ;;  %s3266_s19 = sld [smem:[#allocation2]] }
  0x15   : > { %v6128_v48 = vrot.slane %v6125_v47, %v881_v46  ;;  %v6133_v53 = vrot.slane %v6125_v47, %v891_v49  ;;  %v6139_v60 = vrot.slane %v6125_v47, %v901_v54  ;;  %v911_v61 = vsub.s32 3, %v6119_v45  ;;  %s4791_s20 = sshll.u32 %s7979_s16, 4 }
  0x16   : > { %v451_v15 = vsub.f32 %v449_v9, %v450_v12  ;;  %v461_v16 = vsub.f32 %v459_v10, %v460_v13  ;;  %5098 = vmatprep.subr.mxu0 %v383_v14  ;;  %v470_v17 = vsub.f32 %v362_v11, %v383_v14  ;;  %v7689_v41 = vand.u32 4294901760, %v6107_v40  ;;  %s357_s23 = scalar_lea.vmem %s7688_s10, %s4791_s20 }
  0x17   : > { %5099 = vmatpush3.msra.mxu0 %v383_v14  ;;  %7795 = vst [vmem:[#allocation4_spill] sm:$0xff] %v6128_v48  ;;  %7796 = vst [vmem:[#allocation5_spill] sm:$0xff] %v6133_v53  ;;  %v921_v63 = vsub.s32 5, %v6119_v45  ;;  %v6152_v8 = vrot.slane %v6125_v47, %v911_v61  ;;  %v941_v38 = vsub.s32 7, %v6119_v45 }
  0x18   : > { %v452_v18 = vand.u32 4294901760, %v451_v15  ;;  %v462_v19 = vand.u32 4294901760, %v461_v16  ;;  %v471_v20 = vand.u32 4294901760, %v470_v17  ;;  %v1047_v42 = vsub.f32 %v6107_v40, %v7689_v41  ;;  %7797 = vst [vmem:[#allocation6_spill] sm:$0xff] %v6139_v60 }
  0x19   : > { %7798 = vst [vmem:[#allocation7_spill] sm:$0xff] %v6152_v8  ;;  %v6157_v11 = vrot.slane %v6125_v47, %v921_v63 }
  0x1a   : > { %5100 = vmatprep.mubr.f32.mxu0 %v452_v18  ;;  %v472_v21 = vsub.f32 %v470_v17, %v471_v20  ;;  %v1048_v43 = vand.u32 4294901760, %v1047_v42 }
  0x1b   : > { %5101 = vmatmul.mubr.f32.vlgmr.msra.gmra.mrb[0].mxu0 %v462_v19  ;;  %7799 = vst [vmem:[#allocation8_spill] sm:$0xff] %v6157_v11 }
  0x1c   : > { %5105 = vmatprep.mubr.f32.mxu0 %v448_v6  ;;  %v473_v22 = vand.u32 4294901760, %v472_v21  ;;  %1049 = vmatprep.mubr.f32.mxu1 %v1048_v43 }
  0x1e   : > { %5103 = vmatprep.subr.mxu0 %v473_v22 }
  0x1f   : > { %5104 = vmatpush3.msra.mxu0 %v473_v22 }
  0x20   : > { %5108 = vmatprep.subr.mxu0 %v470_v17 }
  0x23   : > { %5106 = vmatmul.mubr.f32.vlgmr.msra.gmra.mrb[0].mxu0 %v458_v7 }
  0x24   : > { %5109 = vmatpush3.msra.mxu0 %v470_v17  ;;  %5110 = vmatprep.mubr.f32.mxu0 %v449_v9 }
  0x25   : > { %5113 = vmatprep.subr.mxu0 %v383_v14 }
  0x2b   : > { %5111 = vmatmul.mubr.f32.vlgmr.msra.gmra.mrb[0].mxu0 %v459_v10 }
  0x2c   : > { %5114 = vmatpush3.msra.mxu0 %v383_v14  ;;  %5115 = vmatprep.mubr.f32.mxu0 %v450_v12 }
  0x2d   : > { %5118 = vmatprep.subr.mxu0 %v471_v20 }
  0x33   : > { %5116 = vmatmul.mubr.f32.vlgmr.msra.gmra.mrb[0].mxu0 %v460_v13 }
  0x34   : > { %5119 = vmatpush3.msra.mxu0 %v471_v20  ;;  %5120 = vmatprep.mubr.f32.mxu0 %v448_v6 }
  0x35   : > { %5123 = vmatprep.subr.mxu0 %v383_v14 }
  0x3b   : > { %5121 = vmatmul.mubr.f32.vlgmr.msra.gmra.mrb[0].mxu0 %v458_v7 }
  0x3c   : > { %5124 = vmatpush3.msra.mxu0 %v383_v14  ;;  %5125 = vmatprep.mubr.f32.mxu0 %v448_v6  ;;  %v931_v14 = vsub.s32 6, %v6119_v45 }
  0x3e   : > { %v6182_v37 = vrot.slane %v6125_v47, %v931_v14 }
  0x40   : > { %7800 = vst [vmem:[#allocation9_spill] sm:$0xff] %v6182_v37 }
  0x43   : > { %5126 = vmatmul.mubr.f32.vlgmr.msra.gmra.mrb[0].mxu0 %v458_v7 }
  0x8f   : > { %v368_v23 = vpop.permute.xlu0 %367 }
  0x93   : > { %v373_v25 = vpop.permute.xlu0 %372 }
 0x116   : > { %v5127_v26 = vpop.f32.mrb[0].mxu0 }
 0x117   : > { %v6050_v27 = vadd.f32 %v5127_v26, %v373_v25  ;;  %v861_v28 = vpop.f32.mrb[1].mxu0 }
 0x118   : > { %v6052_v29 = vadd.f32 %v861_v28, %v368_v23 }
 0x119   : > { %877 = vrot.lane.b32.xlu1 %v6050_v27, %s5957_s28  ;;  %v990_v30 = vand.u32 4294901760, %v6050_v27 }
 0x11a   : > { %7794 = vst [vmem:[#allocation3_spill] sm:$0xff] %v6052_v29  ;;  %885 = vrot.lane.b32.xlu0 %v6052_v29, %s5958_s29  ;;  %v987_v31 = vand.u32 4294901760, %v6052_v29 }
 0x11b   : > { %v6063_v32 = vsub.f32 %v6050_v27, %v990_v30 }
 0x11c   : > { %v6068_v33 = vsub.f32 %v6052_v29, %v987_v31 }
 0x11d   : > { %875 = vrot.lane.b32.xlu1 %v6052_v29, %s5957_s28  ;;  %v7690_v34 = vand.u32 4294901760, %v6063_v32 }
 0x11e   : > { %895 = vrot.lane.b32.xlu0 %v6052_v29, %s5959_s30  ;;  %v7691_v35 = vand.u32 4294901760, %v6068_v33 }
 0x120   : > { %v6080_v36 = vpack.c.bf16 %v7690_v34, %v7691_v35 }
 0x121   : > { %887 = vrot.lane.b32.xlu1 %v6050_v27, %s5958_s29 }
 0x122   : > { %905 = vrot.lane.b32.xlu0 %v6052_v29, %s5960_s11 }
 0x125   : > { %897 = vrot.lane.b32.xlu1 %v6050_v27, %s5959_s30 }
 0x126   : > { %915 = vrot.lane.b32.xlu0 %v6052_v29, %s5961_s12 }
 0x129   : > { %907 = vrot.lane.b32.xlu1 %v6050_v27, %s5960_s11 }
 0x12a   : > { %925 = vrot.lane.b32.xlu0 %v6052_v29, %s5962_s13 }
 0x12d   : > { %917 = vrot.lane.b32.xlu1 %v6050_v27, %s5961_s12 }
 0x12e   : > { %935 = vrot.lane.b32.xlu0 %v6052_v29, %s5963_s18 }
 0x131   : > { %927 = vrot.lane.b32.xlu1 %v6050_v27, %s5962_s13 }
 0x132   : > { %945 = vrot.lane.b32.xlu0 %v6052_v29, %s5964_s9 }
 0x135   : > { %937 = vrot.lane.b32.xlu1 %v6050_v27, %s5963_s18 }
 0x139   : > { %947 = vrot.lane.b32.xlu1 %v6050_v27, %s5964_s9 }
 0x18b   : > { %v878_v50 = vpop.permute.xlu1 %877 }
 0x18c   : > { %v884_v51 = vmul.f32 %v6128_v48, %v878_v50  ;;  %v886_v52 = vpop.permute.xlu0 %885 }
 0x18d   : > { %v893_v59 = vmul.f32 %v6133_v53, %v886_v52 }
 0x18e   : > { %v966_v55 = vand.u32 4294901760, %v884_v51 }
 0x18f   : > { %v876_v56 = vpop.permute.xlu1 %875  ;;  %v969_v6 = vand.u32 4294901760, %v893_v59 }
 0x190   : > { %v883_v57 = vmul.f32 %v6128_v48, %v876_v56  ;;  %v896_v58 = vpop.permute.xlu0 %895  ;;  %v6143_v0 = vsub.f32 %v884_v51, %v966_v55 }
 0x191   : > { %v903_v7 = vmul.f32 %v6139_v60, %v896_v58  ;;  %v6167_v19 = vsub.f32 %v893_v59, %v969_v6  ;;  %v874_v58 = vld [vmem:[%s7681_s3 + $0x18] sm:$0xff] }
 0x192   : > { %v963_v62 = vand.u32 4294901760, %v883_v57  ;;  %v7700_v12 = vand.u32 4294901760, %v6143_v0 }
 0x193   : > { %v888_v1 = vpop.permute.xlu1 %887  ;;  %v975_v20 = vand.u32 4294901760, %v903_v7  ;;  %v7696_v49 = vand.u32 4294901760, %v6167_v19 }
 0x194   : > { %v6145_v2 = vsub.f32 %v883_v57, %v963_v62  ;;  %v894_v3 = vmul.f32 %v6133_v53, %v888_v1  ;;  %v906_v4 = vpop.permute.xlu0 %905  ;;  %v6148_v5 = vpack.c.bf16 %v966_v55, %v963_v62  ;;  %v6199_v57 = vrot.slane %v6125_v47, %v941_v38 }
 0x195   : > { %v913_v21 = vmul.f32 %v6152_v8, %v906_v4  ;;  %v6192_v50 = vsub.f32 %v903_v7, %v975_v20  ;;  %v871_v7 = vld [vmem:[%s7681_s3] sm:$0xff]  ;;  %v6248_v38 = vpack.c.bf16 %v990_v30, %v987_v31 }
 0x196   : > { %v7701_v9 = vand.u32 4294901760, %v6145_v2  ;;  %v972_v10 = vand.u32 4294901760, %v894_v3  ;;  %5238 = vmatpush1.bf16.msra.mxu1 %v6148_v5  ;;  %7801 = vst [vmem:[#allocation10_spill] sm:$0xff] %v6199_v57 }
 0x197   : > { %v898_v13 = vpop.permute.xlu1 %897  ;;  %5239 = vmatprep.subr.bf16.mxu1 %v7706_v24  ;;  %v981_v51 = vand.u32 4294901760, %v913_v21  ;;  %v7692_v47 = vand.u32 4294901760, %v6192_v50 }
 0x198   : > { %v6162_v15 = vsub.f32 %v894_v3, %v972_v10  ;;  %v904_v16 = vmul.f32 %v6139_v60, %v898_v13  ;;  %v916_v17 = vpop.permute.xlu0 %915  ;;  %v6165_v18 = vpack.c.bf16 %v972_v10, %v969_v6  ;;  %v6174_v22 = vpack.c.bf16 %v7700_v12, %v7701_v9 }
 0x199   : > { %v6177_v25 = vmul.f32 %v6157_v11, %v916_v17  ;;  %v6217_v3 = vsub.f32 %v913_v21, %v981_v51  ;;  %v960_v10 = vsel %vm955_vm1, %v874_v58, 0 }
 0x19a   : > { %v978_v23 = vand.u32 4294901760, %v904_v16  ;;  %5241 = vmatpush1.bf16.msra.mxu1 %v6165_v18  ;;  %v7699_v26 = vand.u32 4294901760, %v6162_v15  ;;  %v6256_v58 = vand.u32 4294901760, %v960_v10 }
 0x19b   : > { %v908_v28 = vpop.permute.xlu1 %907  ;;  %5242 = vmatprep.subr.bf16.mxu1 %v7706_v24  ;;  %v993_v52 = vand.u32 4294901760, %v6177_v25 }
 0x19c   : > { %v6186_v42 = vsub.f32 %v904_v16, %v978_v23  ;;  %v914_v43 = vmul.f32 %v6152_v8, %v908_v28  ;;  %v926_v44 = vpop.permute.xlu0 %925  ;;  %v6189_v46 = vpack.c.bf16 %v978_v23, %v975_v20  ;;  %v6209_v59 = vpack.c.bf16 %v7699_v26, %v7696_v49  ;;  %v6232_v20 = vld [vmem:[%s7686_s8 + $0x8] ss:$0 sm:$0xff] }
 0x19d   : > { %v933_v45 = vmul.f32 %v6182_v37, %v926_v44  ;;  %v6220_v4 = vsub.f32 %v6177_v25, %v993_v52  ;;  %7802 = vst [vmem:[#allocation11_spill] sm:$0xff] %v6232_v20  ;;  %v6251_v44 = vand.u32 4294901760, %v871_v7 }
 0x19e   : > { %v984_v54 = vand.u32 4294901760, %v914_v43  ;;  %5244 = vmatpush1.bf16.msra.mxu1 %v6189_v46  ;;  %v7693_v55 = vand.u32 4294901760, %v6186_v42 }
 0x19f   : > { %v918_v56 = vpop.permute.xlu1 %917  ;;  %5245 = vmatprep.subr.bf16.mxu1 %v7706_v24  ;;  %v999_v14 = vand.u32 4294901760, %v933_v45  ;;  %v7697_v30 = vand.u32 4294901760, %v6220_v4 }
 0x1a0   : > { %v6211_v61 = vsub.f32 %v914_v43, %v984_v54  ;;  %v924_v62 = vmul.f32 %v6157_v11, %v918_v56  ;;  %v936_v63 = vpop.permute.xlu0 %935  ;;  %v6214_v1 = vpack.c.bf16 %v984_v54, %v981_v51  ;;  %v6239_v21 = vpack.c.bf16 %v7693_v55, %v7692_v47 }
 0x1a1   : > { %v943_v16 = vmul.f32 %v6199_v57, %v936_v63  ;;  %v7694_v43 = vand.u32 4294901760, %v6217_v3  ;;  %v6262_v31 = vsub.f32 %v933_v45, %v999_v14  ;;  %v6277_v47 = vsub.f32 %v871_v7, %v6251_v44 }
 0x1a2   : > { %v996_v6 = vand.u32 4294901760, %v924_v62  ;;  %5247 = vmatpush1.bf16.msra.mxu1 %v6214_v1  ;;  %v7695_v13 = vand.u32 4294901760, %v6211_v61 }
 0x1a3   : > { %v928_v17 = vpop.permute.xlu1 %927  ;;  %5248 = vmatprep.subr.bf16.mxu1 %v7706_v24  ;;  %v1005_v63 = vand.u32 4294901760, %v943_v16 }
 0x1a4   : > { %v6241_v23 = vsub.f32 %v924_v62, %v996_v6  ;;  %v934_v25 = vmul.f32 %v6182_v37, %v928_v17  ;;  %v946_v28 = vpop.permute.xlu0 %945  ;;  %v873_v62 = vld [vmem:[%s7681_s3 + $0x10] sm:$0xff]  ;;  %v6274_v35 = vpack.c.bf16 %v996_v6, %v993_v52  ;;  %v6290_v52 = vsub.f32 %v960_v10, %v6256_v58 }
 0x1a5   : > { %v953_v56 = vmul.f32 %v6232_v20, %v946_v28  ;;  %v6269_v28 = vpack.c.bf16 %v7695_v13, %v7694_v43  ;;  %v6279_v45 = vand.u32 4294901760, %v873_v62  ;;  %v7702_v6 = vand.u32 4294901760, %v6262_v31 }
 0x1a6   : > { %v7698_v51 = vand.u32 4294901760, %v6241_v23  ;;  %v1002_v54 = vand.u32 4294901760, %v934_v25  ;;  %5250 = vmatpush1.bf16.msra.mxu1 %v6248_v38  ;;  %v6293_v7 = vsub.f32 %v943_v16, %v1005_v63 }
 0x1a7   : > { %v938_v17 = vpop.permute.xlu1 %937  ;;  %5251 = vmatprep.subr.bf16.mxu1 %v7706_v24  ;;  %v1011_v13 = vand.u32 4294901760, %v953_v56  ;;  %v6303_v12 = vsub.f32 %v873_v62, %v6279_v45  ;;  %v7803_v62 = vand.u32 4294901760, %v6145_v2 }
 0x1a8   : > { %v6271_v41 = vsub.f32 %v934_v25, %v1002_v54  ;;  %v944_v34 = vmul.f32 %v6199_v57, %v938_v17  ;;  %v6285_v55 = vpack.c.bf16 %v7698_v51, %v7697_v30  ;;  %v6299_v51 = vpack.c.bf16 %v1002_v54, %v999_v14 }
 0x1a9   : > { %v6311_v16 = vsub.f32 %v953_v56, %v1011_v13  ;;  %v7710_v54 = vand.u32 4294901760, %v6293_v7  ;;  %v7804_v56 = vand.u32 4294901760, %v6277_v47  ;;  %v7810_v8 = vand.u32 4294901760, %v6303_v12 }
 0x1aa   : > { %v7703_v43 = vand.u32 4294901760, %v6271_v41  ;;  %v1008_v25 = vand.u32 4294901760, %v944_v34  ;;  %5253 = vmatpush1.bf16.msra.mxu1 %v6274_v35 }
 0x1ab   : > { %v948_v17 = vpop.permute.xlu1 %947  ;;  %5254 = vmatprep.subr.bf16.mxu1 %v7706_v24 }
 0x1ac   : > { %v6296_v49 = vsub.f32 %v944_v34, %v1008_v25  ;;  %v954_v30 = vmul.f32 %v6232_v20, %v948_v17  ;;  %v6309_v10 = vpack.c.bf16 %v7703_v43, %v7702_v6  ;;  %v1079_v17 = vsub.f32 %v6145_v2, %v7803_v62 }
 0x1ad   : > { %v6323_v6 = vpack.c.bf16 %v1008_v25, %v1005_v63  ;;  %v1053_v43 = vsub.f32 %v6277_v47, %v7804_v56  ;;  %v7807_v25 = vand.u32 4294901760, %v6290_v52  ;;  %v7808_v34 = vmov 0.0|0.0  }
 0x1ae   : > { %v1014_v9 = vand.u32 4294901760, %v954_v30  ;;  %5256 = vmatpush1.bf16.msra.mxu1 %v6299_v51  ;;  %v7805_v14 = vand.u32 4294901760, %v6296_v49  ;;  %v1080_v57 = vand.u32 4294901760, %v1079_v17  ;;  %v7811_v17 = vand.u32 4294901760, %v6167_v19 }
 0x1af   : > { %5257 = vmatprep.subr.bf16.mxu1 %v7706_v24  ;;  %v7806_v24 = vand.u32 4294901760, %v6143_v0  ;;  %v1062_v56 = vsub.f32 %v6290_v52, %v7807_v25  ;;  %v1054_v11 = vand.u32 4294901760, %v1053_v43  ;;  %v1068_v25 = vsub.f32 %v6303_v12, %v7810_v8 }
 0x1b0   : > { %v6321_v26 = vsub.f32 %v954_v30, %v1014_v9  ;;  %v6333_v20 = vpack.c.bf16 %v7805_v14, %v7710_v54  ;;  %v7721_v30 = vand.u32 4294901760, %v6311_v16  ;;  %v7809_v14 = vand.u32 4294901760, %v6162_v15 }
 0x1b1   : > { %v1086_v62 = vsub.f32 %v6143_v0, %v7806_v24  ;;  %v6348_v37 = vpack.c.bf16 %v1014_v9, %v1011_v13  ;;  %v1093_v53 = vsub.f32 %v6167_v19, %v7811_v17  ;;  %v1063_v9 = vand.u32 4294901760, %v1062_v56 }
 0x1b2   : > { %v7722_v63 = vand.u32 4294901760, %v6321_v26  ;;  %5259 = vmatpush1.bf16.msra.mxu1 %v6323_v6  ;;  %v1100_v54 = vsub.f32 %v6162_v15, %v7809_v14  ;;  %v7812_v14 = vand.u32 4294901760, %v6186_v42  ;;  %v7813_v8 = vand.u32 4294901760, %v6192_v50 }
 0x1b3   : > { %5260 = vmatprep.subr.bf16.mxu1 %v7808_v34  ;;  %v1087_v60 = vand.u32 4294901760, %v1086_v62  ;;  %v1094_v48 = vand.u32 4294901760, %v1093_v53  ;;  %v7814_v17 = vand.u32 4294901760, %v6211_v61 }
 0x1b4   : > { %v6354_v24 = vpack.c.bf16 %v7722_v63, %v7721_v30  ;;  %v1101_v13 = vand.u32 4294901760, %v1100_v54  ;;  %v1114_v30 = vsub.f32 %v6186_v42, %v7812_v14  ;;  %v1069_v63 = vand.u32 4294901760, %v1068_v25 }
 0x1b5   : > { %v5264_v43 = vpack.c.bf16 %v1087_v60, %v1080_v57  ;;  %v1107_v62 = vsub.f32 %v6192_v50, %v7813_v8  ;;  %v1128_v54 = vsub.f32 %v6211_v61, %v7814_v17  ;;  %v7815_v60 = vand.u32 4294901760, %v6217_v3 }
 0x1b6   : > { %5262 = vmatpush1.bf16.msra.mxu1 %v6348_v37  ;;  %v1115_v56 = vand.u32 4294901760, %v1114_v30  ;;  %v5267_v29 = vpack.c.bf16 %v1101_v13, %v1094_v48  ;;  %v7816_v30 = vand.u32 4294901760, %v6068_v33 }
 0x1b7   : > { %5263 = vmatprep.subr.bf16.mxu1 %v7808_v34  ;;  %v1108_v14 = vand.u32 4294901760, %v1107_v62  ;;  %v1121_v53 = vsub.f32 %v6217_v3, %v7815_v60 }
 0x1b8   : > { %v1135_v25 = vsub.f32 %v6068_v33, %v7816_v30  ;;  %v7821_v30 = vand.u32 4294901760, %v6262_v31 }
 0x1b9   : > { %1055 = vmatmul.mubr.f32.vlgmr.msra.gmra.mrb[0].mxu1 %v1054_v11  ;;  %v1129_v11 = vand.u32 4294901760, %v1128_v54  ;;  %v5270_v57 = vpack.c.bf16 %v1115_v56, %v1108_v14  ;;  %v7819_v56 = vand.u32 4294901760, %v6220_v4  ;;  %v7820_v14 = vand.u32 4294901760, %v6271_v41 }
 0x1ba   : > { %5265 = vmatpush1.bf16.msra.mxu1 %v5264_v43  ;;  %1064 = vmatprep.mubr.f32.mxu1 %v1063_v9  ;;  %v7817_v9 = vand.u32 4294901760, %v6063_v32  ;;  %v1136_v8 = vand.u32 4294901760, %v1135_v25 }
 0x1bb   : > { %5266 = vmatprep.subr.bf16.mxu1 %v7808_v34  ;;  %v1149_v17 = vsub.f32 %v6220_v4, %v7819_v56  ;;  %v1170_v60 = vsub.f32 %v6271_v41, %v7820_v14 }
 0x1bc   : > { %v1142_v48 = vsub.f32 %v6063_v32, %v7817_v9  ;;  %v7822_v9 = vand.u32 4294901760, %v6296_v49 }
 0x1bd   : > { %1070 = vmatmul.mubr.f32.gmra.mrb[2].mxu1 %v1069_v63  ;;  %v1122_v63 = vand.u32 4294901760, %v1121_v53  ;;  %v1171_v25 = vand.u32 4294901760, %v1170_v60  ;;  %v7825_v60 = vand.u32 4294901760, %v6311_v16 }
 0x1be   : > { %5268 = vmatpush1.bf16.msra.mxu1 %v5267_v29  ;;  %1230 = vmatprep.mubr.f32.mxu1 %v6102_v39  ;;  %v7818_v29 = vand.u32 4294901760, %v6241_v23  ;;  %v1143_v62 = vand.u32 4294901760, %v1142_v48  ;;  %v1184_v48 = vsub.f32 %v6296_v49, %v7822_v9  ;;  %v5294_v9 = vpack.c.bf16 %v6162_v15, %v6167_v19 }
 0x1bf   : > { %5269 = vmatprep.subr.bf16.mxu1 %v7808_v34  ;;  %v5273_v43 = vpack.c.bf16 %v1129_v11, %v1122_v63  ;;  %v1163_v11 = vsub.f32 %v6262_v31, %v7821_v30  ;;  %v5303_v15 = vpack.c.bf16 %v6063_v32, %v6068_v33  ;;  %v5306_v19 = vpack.c.bf16 %v6241_v23, %v6220_v4 }
 0x1c0   : > { %v1156_v13 = vsub.f32 %v6241_v23, %v7818_v29  ;;  %v5276_v53 = vpack.c.bf16 %v1143_v62, %v1136_v8  ;;  %v1185_v8 = vand.u32 4294901760, %v1184_v48  ;;  %v7824_v62 = vand.u32 4294901760, %v6321_v26 }
 0x1c1   : > { %v1164_v29 = vand.u32 4294901760, %v1163_v11  ;;  %v5315_v32 = vpack.c.bf16 %v6321_v26, %v6311_v16  ;;  %v7826_v33 = vand.u32 4294901760, %v6107_v40 }
 0x1c2   : > { %5271 = vmatpush1.bf16.msra.mxu1 %v5270_v57  ;;  %v1157_v54 = vand.u32 4294901760, %v1156_v13  ;;  %v1150_v57 = vand.u32 4294901760, %v1149_v17  ;;  %v7823_v13 = vand.u32 4294901760, %v6293_v7  ;;  %v1198_v56 = vsub.f32 %v6321_v26, %v7824_v62 }
 0x1c3   : > { %5272 = vmatprep.subr.bf16.mxu1 %v7808_v34  ;;  %v5282_v17 = vpack.c.bf16 %v1171_v25, %v1164_v29  ;;  %v5291_v25 = vpack.c.bf16 %v6143_v0, %v6145_v2  ;;  %v5297_v0 = vpack.c.bf16 %v6186_v42, %v6192_v50  ;;  %v5300_v2 = vpack.c.bf16 %v6211_v61, %v6217_v3 }
 0x1c4   : > { %v5279_v63 = vpack.c.bf16 %v1157_v54, %v1150_v57  ;;  %v1199_v54 = vand.u32 4294901760, %v1198_v56  ;;  %v5309_v42 = vpack.c.bf16 %v6271_v41, %v6262_v31  ;;  %v5312_v50 = vpack.c.bf16 %v6296_v49, %v6293_v7 }
 0x1c5   : > { %v7828_v41 = vand.u32 4294901760, %v6290_v52  ;;  %v7829_v26 = vand.u32 4294901760, %v6303_v12 }
 0x1c6   : > { %5274 = vmatpush1.bf16.msra.mxu1 %v5273_v43  ;;  %v1177_v43 = vsub.f32 %v6293_v7, %v7823_v13 }
 0x1c7   : > { %5275 = vmatprep.subr.bf16.mxu1 %v7808_v34 }
 0x1c8   : > { %v1178_v14 = vand.u32 4294901760, %v1177_v43  ;;  %v7830_v43 = vld [vmem:[#allocation3_spill] sm:$0xff] }
 0x1ca   : > { %5277 = vmatpush1.bf16.msra.mxu1 %v5276_v53  ;;  %v1191_v53 = vsub.f32 %v6311_v16, %v7825_v60  ;;  %v5285_v57 = vpack.c.bf16 %v1185_v8, %v1178_v14 }
 0x1cb   : > { %5278 = vmatprep.subr.bf16.mxu1 %v7808_v34 }
 0x1cc   : > { %v1192_v30 = vand.u32 4294901760, %v1191_v53 }
 0x1ce   : > { %5280 = vmatpush1.bf16.msra.mxu1 %v5279_v63  ;;  %v5288_v11 = vpack.c.bf16 %v1199_v54, %v1192_v30 }
 0x1cf   : > { %5281 = vmatprep.subr.bf16.mxu1 %v7808_v34 }
 0x1d2   : > { %5283 = vmatpush1.bf16.msra.mxu1 %v5282_v17 }
 0x1d3   : > { %5284 = vmatprep.subr.bf16.mxu1 %v7808_v34 }
 0x1d6   : > { %5286 = vmatpush1.bf16.msra.mxu1 %v5285_v57 }
 0x1d7   : > { %5287 = vmatprep.subr.bf16.mxu1 %v7808_v34 }
 0x1da   : > { %5289 = vmatpush1.bf16.msra.mxu1 %v5288_v11 }
 0x1db   : > { %5290 = vmatprep.subr.bf16.mxu1 %v7808_v34 }
 0x1dd   : > { %1232 = vmatmul.mubr.f32.vlgmr.msra.gmra.mrb[0].mxu1 %v6251_v44 }
 0x1de   : > { %5292 = vmatpush1.bf16.msra.mxu1 %v5291_v25  ;;  %1237 = vmatprep.mubr.f32.mxu1 %v6256_v58 }
 0x1df   : > { %5293 = vmatprep.subr.bf16.mxu1 %v7808_v34 }
 0x1e1   : > { %1239 = vmatmul.mubr.f32.gmra.mrb[2].mxu1 %v6279_v45 }
 0x1e2   : > { %5295 = vmatpush1.bf16.msra.mxu1 %v5294_v9  ;;  %1346 = vmatprep.mubr.f32.mxu1 %v6107_v40  ;;  %v7827_v40 = vand.u32 4294901760, %v6277_v47 }
 0x1e3   : > { %5296 = vmatprep.subr.bf16.mxu1 %v7808_v34 }
 0x1e6   : > { %5298 = vmatpush1.bf16.msra.mxu1 %v5297_v0 }
 0x1e7   : > { %5299 = vmatprep.subr.bf16.mxu1 %v7808_v34 }
 0x1ea   : > { %5301 = vmatpush1.bf16.msra.mxu1 %v5300_v2  ;;  %v2213_v2 = vld [vmem:[%s7683_s5 + $0x8] sm:$0xff] }
 0x1eb   : > { %5302 = vmatprep.subr.bf16.mxu1 %v7808_v34 }
 0x1ee   : > { %5304 = vmatpush1.bf16.msra.mxu1 %v5303_v15  ;;  %v2293_v15 = vsel %vm955_vm1, %v2213_v2, 0 }
 0x1ef   : > { %5305 = vmatprep.subr.bf16.mxu1 %v7808_v34 }
 0x1f2   : > { %5307 = vmatpush1.bf16.msra.mxu1 %v5306_v19  ;;  %v6562_v19 = vand.u32 4294901760, %v2293_v15 }
 0x1f3   : > { %5308 = vmatprep.subr.bf16.mxu1 %v7808_v34 }
 0x1f6   : > { %5310 = vmatpush1.bf16.msra.mxu1 %v5309_v42  ;;  %v6566_v42 = vsub.f32 %v2293_v15, %v6562_v19 }
 0x1f7   : > { %5311 = vmatprep.subr.bf16.mxu1 %v7808_v34 }
 0x1fa   : > { %5313 = vmatpush1.bf16.msra.mxu1 %v5312_v50  ;;  %v7726_v50 = vand.u32 4294901760, %v6566_v42 }
 0x1fb   : > { %5314 = vmatprep.subr.bf16.mxu1 %v7808_v34 }
 0x1fe   : > { %5316 = vmatpush1.bf16.msra.mxu1 %v5315_v32  ;;  %v2389_v32 = vsub.f32 %v6566_v42, %v7726_v50 }
 0x1ff   : > { %5317 = vmatprep.subr.bf16.mxu1 %v7808_v34 }
 0x201   : > { %1349 = vmatmul.mubr.f32.vlgmr.msra.gmra.mrb[0].mxu1 %v6277_v47 }
 0x202   : > { %5319 = vmatpush1.bf16.msra.mxu1 %v6148_v5  ;;  %1355 = vmatprep.mubr.f32.mxu1 %v6290_v52 }
 0x203   : > { %5320 = vmatprep.subr.bf16.mxu1 %v7808_v34 }
 0x205   : > { %1358 = vmatmul.mubr.f32.gmra.mrb[2].mxu1 %v6303_v12 }
 0x206   : > { %5322 = vmatpush1.bf16.msra.mxu1 %v6165_v18  ;;  %1448 = vmatprep.mubr.f32.mxu1 %v7826_v33  ;;  %v2268_v33 = vld [vmem:[%s7684_s6] sm:$0xff] }
 0x207   : > { %5323 = vmatprep.subr.bf16.mxu1 %v7808_v34 }
 0x20a   : > { %5325 = vmatpush1.bf16.msra.mxu1 %v6189_v46 }
 0x20b   : > { %5326 = vmatprep.subr.bf16.mxu1 %v7808_v34 }
 0x20e   : > { %5328 = vmatpush1.bf16.msra.mxu1 %v6214_v1 }
 0x20f   : > { %5329 = vmatprep.subr.bf16.mxu1 %v7808_v34 }
 0x212   : > { %5331 = vmatpush1.bf16.msra.mxu1 %v6248_v38 }
 0x213   : > { %5332 = vmatprep.subr.bf16.mxu1 %v7808_v34 }
 0x216   : > { %5334 = vmatpush1.bf16.msra.mxu1 %v6274_v35 }
 0x217   : > { %5335 = vmatprep.subr.bf16.mxu1 %v7808_v34 }
 0x21a   : > { %5337 = vmatpush1.bf16.msra.mxu1 %v6299_v51 }
 0x21b   : > { %5338 = vmatprep.subr.bf16.mxu1 %v7808_v34 }
 0x21e   : > { %5340 = vmatpush1.bf16.msra.mxu1 %v6323_v6 }
 0x21f   : > { %5341 = vmatprep.subr.bf16.mxu1 %v7808_v34 }
 0x222   : > { %5343 = vmatpush1.bf16.msra.mxu1 %v6348_v37 }
 0x223   : > { %5344 = vmatprep.subr.bf16.mxu1 %v7808_v34 }
 0x225   : > { %1452 = vmatmul.mubr.f32.vlgmr.msra.gmra.mrb[0].mxu1 %v7827_v40  ;;  %v2390_v40 = vand.u32 4294901760, %v2389_v32  ;;  %v2215_v32 = vld [vmem:[%s7683_s5 + $0x18] sm:$0xff] }
 0x226   : > { %5346 = vmatpush1.bf16.msra.mxu1 %v6174_v22  ;;  %1459 = vmatprep.mubr.f32.mxu1 %v7828_v41  ;;  %v2270_v41 = vld [vmem:[%s7684_s6 + $0x10] sm:$0xff] }
 0x227   : > { %5347 = vmatprep.subr.bf16.mxu1 %v7808_v34 }
 0x229   : > { %1463 = vmatmul.mubr.f32.gmra.mrb[2].mxu1 %v7829_v26 }
 0x22a   : > { %5349 = vmatpush1.bf16.msra.mxu1 %v6209_v59  ;;  %1587 = vmatprep.mubr.f32.mxu1 %v6102_v39 }
 0x22b   : > { %5350 = vmatprep.subr.bf16.mxu1 %v7808_v34 }
 0x22e   : > { %5352 = vmatpush1.bf16.msra.mxu1 %v6239_v21 }
 0x22f   : > { %5353 = vmatprep.subr.bf16.mxu1 %v7808_v34 }
 0x232   : > { %5355 = vmatpush1.bf16.msra.mxu1 %v6269_v28 }
 0x233   : > { %5356 = vmatprep.subr.bf16.mxu1 %v7808_v34 }
 0x236   : > { %5358 = vmatpush1.bf16.msra.mxu1 %v6080_v36 }
 0x237   : > { %5359 = vmatprep.subr.bf16.mxu1 %v7808_v34 }
 0x23a   : > { %5361 = vmatpush1.bf16.msra.mxu1 %v6285_v55 }
 0x23b   : > { %5362 = vmatprep.subr.bf16.mxu1 %v7808_v34 }
 0x23e   : > { %5364 = vmatpush1.bf16.msra.mxu1 %v6309_v10 }
 0x23f   : > { %5365 = vmatprep.subr.bf16.mxu1 %v7808_v34 }
 0x242   : > { %5367 = vmatpush1.bf16.msra.mxu1 %v6333_v20 }
 0x243   : > { %5368 = vmatprep.subr.bf16.mxu1 %v7808_v34 }
 0x246   : > { %5370 = vmatpush1.bf16.msra.mxu1 %v6354_v24 }
 0x247   : > { %5371 = vmatprep.subr.bf16.mxu1 %v7808_v34 }
 0x249   : > { %1589 = vmatmul.mubr.f32.vlgmr.msra.gmra.mrb[0].mxu1 %v6251_v44 }
 0x24a   : > { %5373 = vmatpush1.bf16.msra.mxu1 %v6148_v5  ;;  %1594 = vmatprep.mubr.f32.mxu1 %v6256_v58 }
 0x24b   : > { %5374 = vmatprep.subr.bf16.mxu1 %v7808_v34 }
 0x24d   : > { %1596 = vmatmul.mubr.f32.gmra.mrb[2].mxu1 %v6279_v45 }
 0x24e   : > { %5376 = vmatpush1.bf16.msra.mxu1 %v6165_v18  ;;  %1684 = vmatprep.mubr.f32.mxu1 %v6102_v39 }
 0x24f   : > { %5377 = vmatprep.subr.bf16.mxu1 %v7808_v34 }
 0x252   : > { %5379 = vmatpush1.bf16.msra.mxu1 %v6189_v46 }
 0x253   : > { %5380 = vmatprep.subr.bf16.mxu1 %v7808_v34 }
 0x256   : > { %5382 = vmatpush1.bf16.msra.mxu1 %v6214_v1 }
 0x257   : > { %5383 = vmatprep.subr.bf16.mxu1 %v7808_v34 }
 0x25a   : > { %5385 = vmatpush1.bf16.msra.mxu1 %v6248_v38 }
 0x25b   : > { %5386 = vmatprep.subr.bf16.mxu1 %v7808_v34 }
 0x25e   : > { %5388 = vmatpush1.bf16.msra.mxu1 %v6274_v35  ;;  %v1700_v35 = vld [vmem:[%s7682_s4] sm:$0xff] }
 0x25f   : > { %5389 = vmatprep.subr.bf16.mxu1 %v7808_v34  ;;  %v1703_v36 = vsel %vm955_vm1, %v1700_v35, 0  ;;  %v7832_v35 = vld [vmem:[#allocation4_spill] sm:$0xff] }
 0x260   : > { %v1775_v39 = vand.u32 4294901760, %v1703_v36 }
 0x262   : > { %5391 = vmatpush1.bf16.msra.mxu1 %v6299_v51  ;;  %v1776_v5 = vsub.f32 %v1703_v36, %v1775_v39 }
 0x263   : > { %5392 = vmatprep.subr.bf16.mxu1 %v7808_v34 }
 0x264   : > { %v1777_v12 = vand.u32 4294901760, %v1776_v5 }
 0x266   : > { %5394 = vmatpush1.bf16.msra.mxu1 %v6323_v6  ;;  %v1778_v18 = vsub.f32 %v1776_v5, %v1777_v12 }
 0x267   : > { %5395 = vmatprep.subr.bf16.mxu1 %v7808_v34 }
 0x268   : > { %v1779_v22 = vand.u32 4294901760, %v1778_v18 }
 0x26a   : > { %5397 = vmatpush1.bf16.msra.mxu1 %v6348_v37  ;;  %5132 = vmatprep.mubr.f32.mxu0 %v1779_v22  ;;  %v1701_v37 = vld [vmem:[%s7682_s4 + $0x8] sm:$0xff] }
 0x26b   : > { %v1706_v46 = vsel %vm955_vm1, %v1701_v37, 0 }
 0x26c   : > { %v1785_v49 = vand.u32 4294901760, %v1706_v46 }
 0x26d   : > { %1686 = vmatmul.mubr.f32.vlgmr.msra.gmra.mrb[0].mxu1 %v6251_v44 }
 0x26e   : > { %1691 = vmatprep.mubr.f32.mxu1 %v6256_v58  ;;  %v1786_v55 = vsub.f32 %v1706_v46, %v1785_v49  ;;  %v7833_v46 = vld [vmem:[#allocation5_spill] sm:$0xff] }
 0x270   : > { %v1787_v3 = vand.u32 4294901760, %v1786_v55 }
 0x271   : > { %1693 = vmatmul.mubr.f32.gmra.mrb[2].mxu1 %v6279_v45 }
 0x272   : > { %v1788_v51 = vsub.f32 %v1786_v55, %v1787_v3 }
 0x274   : > { %v1789_v45 = vand.u32 4294901760, %v1788_v51 }
 0x340   : > { %v1687_v59 = vpop.f32.mrb[0].mxu1 }
 0x341   : > { %v1698_v61 = vmax.f32 %v1687_v59, 0.0  ;;  %v1689_v1 = vpop.f32.mrb[1].mxu1 }
 0x343   : > { %v1709_v47 = vand.u32 4294901760, %v1698_v61 }
 0x344   : > { %v1694_v4 = vpop.f32.mrb[2].mxu1 }
 0x345   : > { %v1797_v20 = vsub.f32 %v1698_v61, %v1709_v47  ;;  %v1699_v21 = vmax.f32 %v1694_v4, 0.0  ;;  %v1696_v23 = vpop.f32.mrb[3].mxu1 }
 0x347   : > { %v1798_v38 = vand.u32 4294901760, %v1797_v20  ;;  %v1712_v44 = vand.u32 4294901760, %v1699_v21 }
 0x349   : > { %v5398_v58 = vpack.c.bf16 %v1712_v44, %v1709_v47  ;;  %v1804_v31 = vsub.f32 %v1699_v21, %v1712_v44  ;;  %v1799_v52 = vsub.f32 %v1797_v20, %v1798_v38 }
 0x34b   : > { %v1805_v28 = vand.u32 4294901760, %v1804_v31  ;;  %5399 = vmatprep.subr.bf16.mxu0 %v5398_v58  ;;  %v5406_v6 = vpack.c.bf16 %v1804_v31, %v1797_v20  ;;  %v1800_v16 = vand.u32 4294901760, %v1799_v52 }
 0x34c   : > { %5401 = vmatpush3.bf16.msra.mxu0 %v5398_v58 }
 0x34d   : > { %v1806_v7 = vsub.f32 %v1804_v31, %v1805_v28  ;;  %v5414_v10 = vpack.c.bf16 %v1805_v28, %v1798_v38  ;;  %v7834_v38 = vld [vmem:[#allocation6_spill] sm:$0xff] }
 0x34f   : > { %5133 = vmatmul.mubr.f32.vlgmr.msra.gmra.mrb[2].mxu0 %v1789_v45  ;;  %v1807_v24 = vand.u32 4294901760, %v1806_v7 }
 0x350   : > { %5139 = vmatprep.mubr.f32.mxu0 %v1775_v39 }
 0x351   : > { %v5402_v48 = vpack.c.bf16 %v1807_v24, %v1800_v16 }
 0x353   : > { %5403 = vmatprep.subr.bf16.mxu0 %v5402_v48 }
 0x354   : > { %5405 = vmatpush3.bf16.msra.mxu0 %v5402_v48  ;;  %v7836_v48 = vld [vmem:[#allocation7_spill] sm:$0xff] }
 0x355   : > { %5407 = vmatprep.subr.bf16.mxu0 %v5406_v6 }
 0x357   : > { %5140 = vmatmul.mubr.f32.vlgmr.msra.gmra.mrb[2].mxu0 %v1785_v49 }
 0x358   : > { %5409 = vmatpush3.bf16.msra.mxu0 %v5406_v6  ;;  %5146 = vmatprep.mubr.f32.mxu0 %v1776_v5 }
 0x359   : > { %5411 = vmatprep.subr.bf16.mxu0 %v5398_v58 }
 0x35f   : > { %5147 = vmatmul.mubr.f32.vlgmr.msra.gmra.mrb[2].mxu0 %v1786_v55 }
 0x360   : > { %5413 = vmatpush3.bf16.msra.mxu0 %v5398_v58  ;;  %5153 = vmatprep.mubr.f32.mxu0 %v1777_v12 }
 0x361   : > { %5415 = vmatprep.subr.bf16.mxu0 %v5414_v10 }
 0x367   : > { %5154 = vmatmul.mubr.f32.vlgmr.msra.gmra.mrb[2].mxu0 %v1787_v3 }
 0x368   : > { %5417 = vmatpush3.bf16.msra.mxu0 %v5414_v10  ;;  %5160 = vmatprep.mubr.f32.mxu0 %v1775_v39 }
 0x369   : > { %5419 = vmatprep.subr.bf16.mxu0 %v5398_v58 }
 0x36f   : > { %5161 = vmatmul.mubr.f32.vlgmr.msra.gmra.mrb[2].mxu0 %v1785_v49 }
 0x370   : > { %5421 = vmatpush3.bf16.msra.mxu0 %v5398_v58  ;;  %5167 = vmatprep.mubr.f32.mxu0 %v1775_v39 }
 0x371   : > { %5422 = vmatprep.subr.bf16.mxu0 %v7808_v34 }
 0x377   : > { %5168 = vmatmul.mubr.f32.vlgmr.msra.gmra.mrb[2].mxu0 %v1785_v49 }
 0x378   : > { %2391 = vmatprep.mubr.f32.mxu0 %v2390_v40 }
 0x44a   : > { %v5169_v63 = vpop.f32.mrb[2].mxu0 }
 0x44b   : > { %v2211_v29 = vadd.f32 %v6050_v27, %v5169_v63  ;;  %v2200_v13 = vpop.f32.mrb[3].mxu0 }
 0x44c   : > { %v2210_v8 = vadd.f32 %v7830_v43, %v2200_v13 }
 0x44d   : > { %2222 = vrot.lane.b32.xlu1 %v2211_v29, %s5957_s28  ;;  %v2332_v62 = vand.u32 4294901760, %v2211_v29 }
 0x44e   : > { %2220 = vrot.lane.b32.xlu0 %v2210_v8, %s5957_s28  ;;  %v2329_v56 = vand.u32 4294901760, %v2210_v8 }
 0x44f   : > { %v6532_v17 = vsub.f32 %v2211_v29, %v2332_v62 }
 0x450   : > { %v6534_v14 = vpack.c.bf16 %v2332_v62, %v2329_v56  ;;  %v6536_v60 = vsub.f32 %v2210_v8, %v2329_v56 }
 0x451   : > { %2228 = vrot.lane.b32.xlu1 %v2211_v29, %s5958_s29  ;;  %v2513_v53 = vand.u32 4294901760, %v6532_v17 }
 0x452   : > { %2226 = vrot.lane.b32.xlu0 %v2210_v8, %s5958_s29  ;;  %v2506_v27 = vand.u32 4294901760, %v6536_v60 }
 0x453   : > { %v2514_v57 = vsub.f32 %v6532_v17, %v2513_v53 }
 0x454   : > { %v2507_v30 = vsub.f32 %v6536_v60, %v2506_v27  ;;  %v6546_v11 = vpack.c.bf16 %v2513_v53, %v2506_v27 }
 0x455   : > { %2234 = vrot.lane.b32.xlu1 %v2211_v29, %s5959_s30  ;;  %v2515_v25 = vand.u32 4294901760, %v2514_v57  ;;  %v2212_v57 = vld [vmem:[%s7683_s5] sm:$0xff] }
 0x456   : > { %7831 = vst [vmem:[#allocation3_spill] sm:$0xff] %v6546_v11  ;;  %2232 = vrot.lane.b32.xlu0 %v2210_v8, %s5959_s30  ;;  %v2508_v9 = vand.u32 4294901760, %v2507_v30 }
 0x458   : > { %v6550_v0 = vpack.c.bf16 %v2515_v25, %v2508_v9  ;;  %v7837_v9 = vld [vmem:[#allocation8_spill] sm:$0xff] }
 0x459   : > { %2240 = vrot.lane.b32.xlu1 %v2211_v29, %s5960_s11 }
 0x45a   : > { %2238 = vrot.lane.b32.xlu0 %v2210_v8, %s5960_s11 }
 0x45d   : > { %2246 = vrot.lane.b32.xlu1 %v2211_v29, %s5961_s12 }
 0x45e   : > { %2244 = vrot.lane.b32.xlu0 %v2210_v8, %s5961_s12 }
 0x461   : > { %2252 = vrot.lane.b32.xlu1 %v2211_v29, %s5962_s13 }
 0x462   : > { %2250 = vrot.lane.b32.xlu0 %v2210_v8, %s5962_s13 }
 0x465   : > { %2258 = vrot.lane.b32.xlu1 %v2211_v29, %s5963_s18 }
 0x466   : > { %2256 = vrot.lane.b32.xlu0 %v2210_v8, %s5963_s18 }
 0x469   : > { %2264 = vrot.lane.b32.xlu1 %v2211_v29, %s5964_s9 }
 0x46a   : > { %2262 = vrot.lane.b32.xlu0 %v2210_v8, %s5964_s9 }
 0x46e   : > { %2274 = vperm.xlu0 %5940, %v2268_v33  }
 0x472   : > { %2284 = vperm.xlu0 %5940, %v2270_v41  }
 0x4bf   : > { %v2223_v26 = vpop.permute.xlu1 %2222 }
 0x4c0   : > { %v2225_v36 = vmul.f32 %v2223_v26, %v7832_v35  ;;  %v2221_v39 = vpop.permute.xlu0 %2220 }
 0x4c1   : > { %v2224_v5 = vmul.f32 %v2221_v39, %v7832_v35  ;;  %v6645_v39 = vand.u32 4294901760, %v2212_v57 }
 0x4c2   : > { %v2308_v12 = vand.u32 4294901760, %v2225_v36 }
 0x4c3   : > { %v2305_v18 = vand.u32 4294901760, %v2224_v5  ;;  %v2229_v22 = vpop.permute.xlu1 %2228 }
 0x4c4   : > { %v6583_v37 = vsub.f32 %v2225_v36, %v2308_v12  ;;  %v2231_v49 = vmul.f32 %v2229_v22, %v7833_v46  ;;  %v2227_v55 = vpop.permute.xlu0 %2226  ;;  %v2296_v22 = vsel %vm955_vm1, %v2215_v32, 0 }
 0x4c5   : > { %v6586_v59 = vpack.c.bf16 %v2308_v12, %v2305_v18  ;;  %v6588_v61 = vsub.f32 %v2224_v5, %v2305_v18  ;;  %v2230_v1 = vmul.f32 %v2227_v55, %v7833_v46 }
 0x4c6   : > { %v7734_v47 = vand.u32 4294901760, %v6583_v37  ;;  %v2314_v3 = vand.u32 4294901760, %v2231_v49 }
 0x4c7   : > { %v7733_v4 = vand.u32 4294901760, %v6588_v61  ;;  %v2311_v20 = vand.u32 4294901760, %v2230_v1  ;;  %v2235_v21 = vpop.permute.xlu1 %2234  ;;  %5424 = vmatpush1.bf16.msra.mxu0 %v6586_v59 }
 0x4c8   : > { %v6594_v23 = vsub.f32 %v2231_v49, %v2314_v3  ;;  %v2237_v44 = vmul.f32 %v2235_v21, %v7834_v38  ;;  %v2233_v51 = vpop.permute.xlu0 %2232  ;;  %5425 = vmatprep.subr.bf16.mxu0 %v7808_v34  ;;  %v2217_v21 = vld [vmem:[%s7683_s5 + $0x28] sm:$0xff] }
 0x4c9   : > { %v6598_v58 = vpack.c.bf16 %v2314_v3, %v2311_v20  ;;  %v6600_v31 = vsub.f32 %v2230_v1, %v2311_v20  ;;  %v2236_v28 = vmul.f32 %v2233_v51, %v7834_v38  ;;  %v6607_v52 = vpack.c.bf16 %v7734_v47, %v7733_v4  ;;  %v7839_v1 = vld [vmem:[#allocation9_spill] sm:$0xff] }
 0x4ca   : > { %v2320_v45 = vand.u32 4294901760, %v2237_v44  ;;  %v7730_v10 = vand.u32 4294901760, %v6594_v23 }
 0x4cb   : > { %7835 = vst [vmem:[#allocation12_spill] sm:$0xff] %v6607_v52  ;;  %v2317_v6 = vand.u32 4294901760, %v2236_v28  ;;  %v2241_v7 = vpop.permute.xlu1 %2240  ;;  %5427 = vmatpush1.bf16.msra.mxu0 %v6598_v58  ;;  %v7729_v16 = vand.u32 4294901760, %v6600_v31 }
 0x4cc   : > { %v6612_v24 = vsub.f32 %v2237_v44, %v2320_v45  ;;  %v2243_v63 = vmul.f32 %v2241_v7, %v7836_v48  ;;  %v2239_v29 = vpop.permute.xlu0 %2238  ;;  %5428 = vmatprep.subr.bf16.mxu0 %v7808_v34  ;;  %v6670_v7 = vand.u32 4294901760, %v2296_v22 }
 0x4cd   : > { %v6616_v13 = vpack.c.bf16 %v2320_v45, %v2317_v6  ;;  %v6618_v43 = vsub.f32 %v2236_v28, %v2317_v6  ;;  %v2242_v8 = vmul.f32 %v2239_v29, %v7836_v48  ;;  %v6638_v33 = vpack.c.bf16 %v7730_v10, %v7729_v16 }
 0x4ce   : > { %v2326_v62 = vand.u32 4294901760, %v2243_v63  ;;  %v7728_v56 = vand.u32 4294901760, %v6612_v24  ;;  %v6668_v6 = vsub.f32 %v2212_v57, %v6645_v39  ;;  %v7841_v57 = vld [vmem:[#allocation10_spill] sm:$0xff] }
 0x4cf   : > { %v2323_v53 = vand.u32 4294901760, %v2242_v8  ;;  %v2247_v27 = vpop.permute.xlu1 %2246  ;;  %5430 = vmatpush1.bf16.msra.mxu0 %v6616_v13  ;;  %v7727_v30 = vand.u32 4294901760, %v6618_v43  ;;  %7838 = vst [vmem:[#allocation13_spill] sm:$0xff] %v6638_v33 }
 0x4d0   : > { %v6627_v25 = vsub.f32 %v2243_v63, %v2326_v62  ;;  %v2249_v2 = vmul.f32 %v2247_v27, %v7837_v9  ;;  %v2245_v15 = vpop.permute.xlu0 %2244  ;;  %5431 = vmatprep.subr.bf16.mxu0 %v7808_v34  ;;  %v2214_v63 = vld [vmem:[%s7683_s5 + $0x10] sm:$0xff] }
 0x4d1   : > { %v6640_v40 = vpack.c.bf16 %v2326_v62, %v2323_v53  ;;  %v6642_v41 = vsub.f32 %v2242_v8, %v2323_v53  ;;  %v2248_v26 = vmul.f32 %v2245_v15, %v7837_v9  ;;  %v6662_v44 = vpack.c.bf16 %v7728_v56, %v7727_v30 }
 0x4d2   : > { %v2338_v36 = vand.u32 4294901760, %v2249_v2  ;;  %v7732_v5 = vand.u32 4294901760, %v6627_v25  ;;  %v2299_v53 = vsel %vm955_vm1, %v2217_v21, 0  ;;  %v6701_v30 = vsub.f32 %v2296_v22, %v6670_v7  ;;  %v7843_v22 = vld [vmem:[#allocation11_spill] sm:$0xff] }
 0x4d3   : > { %v2335_v12 = vand.u32 4294901760, %v2248_v26  ;;  %v2253_v18 = vpop.permute.xlu1 %2252  ;;  %5433 = vmatpush1.bf16.msra.mxu0 %v6640_v40  ;;  %v7731_v49 = vand.u32 4294901760, %v6642_v41  ;;  %7840 = vst [vmem:[#allocation14_spill] sm:$0xff] %v6662_v44 }
 0x4d4   : > { %v6651_v55 = vsub.f32 %v2249_v2, %v2338_v36  ;;  %v2255_v3 = vmul.f32 %v2253_v18, %v7839_v1  ;;  %v2251_v20 = vpop.permute.xlu0 %2250  ;;  %5434 = vmatprep.subr.bf16.mxu0 %v7808_v34 }
 0x4d5   : > { %v6664_v51 = vsub.f32 %v2248_v26, %v2335_v12  ;;  %v2254_v28 = vmul.f32 %v2251_v20, %v7839_v1  ;;  %v2219_v26 = vld [vmem:[%s7683_s5 + $0x38] sm:$0xff]  ;;  %v6690_v18 = vpack.c.bf16 %v7732_v5, %v7731_v49  ;;  %v6692_v20 = vpack.c.bf16 %v2338_v36, %v2335_v12  ;;  %v2216_v12 = vld [vmem:[%s7683_s5 + $0x20] sm:$0xff] }
 0x4d6   : > { %v2344_v45 = vand.u32 4294901760, %v2255_v3  ;;  %v7739_v29 = vand.u32 4294901760, %v6651_v55  ;;  %v6705_v36 = vand.u32 4294901760, %v2299_v53 }
 0x4d7   : > { %v2341_v8 = vand.u32 4294901760, %v2254_v28  ;;  %v2259_v62 = vpop.permute.xlu1 %2258  ;;  %5436 = vmatpush1.bf16.msra.mxu0 %v6534_v14  ;;  %v7738_v27 = vand.u32 4294901760, %v6664_v51  ;;  %7842 = vst [vmem:[#allocation15_spill] sm:$0xff] %v6690_v18 }
 0x4d8   : > { %v6679_v2 = vsub.f32 %v2255_v3, %v2344_v45  ;;  %v2261_v15 = vmul.f32 %v2259_v62, %v7841_v57  ;;  %v2257_v32 = vpop.permute.xlu0 %2256  ;;  %5437 = vmatprep.subr.bf16.mxu0 %v7808_v34  ;;  %v6697_v62 = vand.u32 4294901760, %v2214_v63 }
 0x4d9   : > { %v6694_v21 = vsub.f32 %v2254_v28, %v2341_v8  ;;  %v2260_v3 = vmul.f32 %v2257_v32, %v7841_v57  ;;  %v2302_v28 = vsel %vm955_vm1, %v2219_v26, 0  ;;  %v6720_v56 = vpack.c.bf16 %v7739_v29, %v7738_v27 }
 0x4da   : > { %v2350_v50 = vand.u32 4294901760, %v2261_v15  ;;  %v6722_v4 = vpack.c.bf16 %v2344_v45, %v2341_v8  ;;  %v6732_v57 = vand.u32 4294901760, %v2216_v12  ;;  %v6737_v45 = vsub.f32 %v2299_v53, %v6705_v36 }
 0x4db   : > { %v2347_v16 = vand.u32 4294901760, %v2260_v3  ;;  %v2265_v10 = vpop.permute.xlu1 %2264  ;;  %5439 = vmatpush1.bf16.msra.mxu0 %v6692_v20  ;;  %7844 = vst [vmem:[#allocation11_spill] sm:$0xff] %v6720_v56  ;;  %v6739_v8 = vand.u32 4294901760, %v2302_v28  ;;  %v7847_v53 = vand.u32 4294901760, %v6694_v21 }
 0x4dc   : > { %v6712_v49 = vsub.f32 %v2261_v15, %v2350_v50  ;;  %v2267_v5 = vmul.f32 %v7843_v22, %v2265_v10  ;;  %v2263_v54 = vpop.permute.xlu0 %2262  ;;  %5440 = vmatprep.subr.bf16.mxu0 %v7808_v34  ;;  %v6728_v15 = vsub.f32 %v2214_v63, %v6697_v62  ;;  %v7845_v63 = vand.u32 4294901760, %v6583_v37 }
 0x4dd   : > { %v6724_v47 = vsub.f32 %v2260_v3, %v2347_v16  ;;  %v2266_v26 = vmul.f32 %v7843_v22, %v2263_v54  ;;  %v2218_v54 = vld [vmem:[%s7683_s5 + $0x30] sm:$0xff]  ;;  %v7846_v22 = vand.u32 4294901760, %v6588_v61  ;;  %v7848_v10 = vand.u32 4294901760, %v6679_v2 }
 0x4de   : > { %v2356_v32 = vand.u32 4294901760, %v2267_v5  ;;  %v2458_v3 = vsub.f32 %v6583_v37, %v7845_v63  ;;  %v6759_v1 = vpack.c.bf16 %v2350_v50, %v2347_v16  ;;  %v7850_v63 = vand.u32 4294901760, %v6668_v6 }
 0x4df   : > { %v2353_v27 = vand.u32 4294901760, %v2266_v26  ;;  %5442 = vmatpush1.bf16.msra.mxu0 %v6722_v4  ;;  %v2451_v29 = vsub.f32 %v6588_v61, %v7846_v22  ;;  %v6757_v38 = vpack.c.bf16 %v7848_v10, %v7847_v53  ;;  %v6769_v35 = vsub.f32 %v2216_v12, %v6732_v57 }
 0x4e0   : > { %v6750_v48 = vsub.f32 %v2267_v5, %v2356_v32  ;;  %5443 = vmatprep.subr.bf16.mxu0 %v7808_v34  ;;  %v2395_v9 = vsub.f32 %v6668_v6, %v7850_v63  ;;  %v6771_v56 = vand.u32 4294901760, %v2218_v54  ;;  %v7851_v10 = vand.u32 4294901760, %v6724_v47 }
 0x4e1   : > { %7849 = vst [vmem:[#allocation16_spill] sm:$0xff] %v6757_v38  ;;  %v6761_v46 = vsub.f32 %v2266_v26, %v2353_v27  ;;  %v7852_v50 = vand.u32 4294901760, %v6712_v49  ;;  %v7854_v53 = vand.u32 4294901760, %v6701_v30  ;;  %v6786_v12 = vsub.f32 %v2302_v28, %v6739_v8 }
 0x4e2   : > { %v2459_v5 = vand.u32 4294901760, %v2458_v3  ;;  %v2452_v38 = vand.u32 4294901760, %v2451_v29  ;;  %v7856_v26 = vand.u32 4294901760, %v6600_v31  ;;  %v6795_v11 = vpack.c.bf16 %v2356_v32, %v2353_v27 }
 0x4e3   : > { %v6777_v16 = vpack.c.bf16 %v7852_v50, %v7851_v10  ;;  %5445 = vmatpush1.bf16.msra.mxu0 %v6759_v1  ;;  %v2404_v63 = vsub.f32 %v6701_v30, %v7854_v53  ;;  %v7855_v10 = vand.u32 4294901760, %v6594_v23  ;;  %v7858_v53 = vand.u32 4294901760, %v6761_v46 }
 0x4e4   : > { %5446 = vmatprep.subr.bf16.mxu0 %v7808_v34  ;;  %7857 = vst [vmem:[#allocation18_spill] sm:$0xff] %v6795_v11  ;;  %v7859_v22 = vand.u32 4294901760, %v6750_v48  ;;  %v2396_v3 = vand.u32 4294901760, %v2395_v9  ;;  %v7861_v29 = vand.u32 4294901760, %v6728_v15  ;;  %v7862_v32 = vand.u32 4294901760, %v6737_v45 }
 0x4e5   : > { %7853 = vst [vmem:[#allocation17_spill] sm:$0xff] %v6777_v16  ;;  %v2472_v50 = vsub.f32 %v6594_v23, %v7855_v10  ;;  %v2465_v16 = vsub.f32 %v6600_v31, %v7856_v26  ;;  %v6808_v10 = vsub.f32 %v2218_v54, %v6771_v56  ;;  %v2405_v27 = vand.u32 4294901760, %v2404_v63 }
 0x4e6   : > { %v6801_v28 = vpack.c.bf16 %v7859_v22, %v7858_v53  ;;  %v2410_v18 = vsub.f32 %v6728_v15, %v7861_v29  ;;  %v2419_v26 = vsub.f32 %v6737_v45, %v7862_v32  ;;  %v7863_v9 = vand.u32 4294901760, %v6612_v24 }
 0x4e7   : > { %5448 = vmatpush1.bf16.msra.mxu0 %v6795_v11  ;;  %v2473_v29 = vand.u32 4294901760, %v2472_v50  ;;  %v2466_v44 = vand.u32 4294901760, %v2465_v16  ;;  %v7864_v54 = vand.u32 4294901760, %v6618_v43  ;;  %v5450_v33 = vpack.c.bf16 %v2459_v5, %v2452_v38 }
 0x4e8   : > { %7860 = vst [vmem:[#allocation19_spill] sm:$0xff] %v6801_v28  ;;  %v2486_v53 = vsub.f32 %v6612_v24, %v7863_v9  ;;  %5449 = vmatprep.subr.bf16.mxu0 %v7808_v34  ;;  %v2411_v63 = vand.u32 4294901760, %v2410_v18  ;;  %v7865_v52 = vand.u32 4294901760, %v6769_v35  ;;  %v2439_v22 = vand.u32 4294901760, %v6808_v10 }
 0x4e9   : > { %v2479_v28 = vsub.f32 %v6618_v43, %v7864_v54  ;;  %v2420_v9 = vand.u32 4294901760, %v2419_v26  ;;  %v7866_v11 = vand.u32 4294901760, %v6786_v12  ;;  %v7867_v38 = vand.u32 4294901760, %v6627_v25 }
 0x4ea   : > { %2397 = vmatmul.mubr.f32.vlgmr.msra.gmra.mrb[4].mxu0 %v2396_v3  ;;  %v2425_v32 = vsub.f32 %v6769_v35, %v7865_v52  ;;  %v2487_v50 = vand.u32 4294901760, %v2486_v53  ;;  %v7868_v5 = vand.u32 4294901760, %v6642_v41  ;;  %v5453_v3 = vpack.c.bf16 %v2473_v29, %v2466_v44 }
 0x4eb   : > { %5451 = vmatpush1.bf16.msra.mxu0 %v5450_v33  ;;  %2406 = vmatprep.mubr.f32.mxu0 %v2405_v27  ;;  %v2434_v16 = vsub.f32 %v6786_v12, %v7866_v11  ;;  %v2480_v54 = vand.u32 4294901760, %v2479_v28  ;;  %v2500_v18 = vsub.f32 %v6627_v25, %v7867_v38  ;;  %v2440_v27 = vsub.f32 %v6808_v10, %v2439_v22 }
 0x4ec   : > { %5452 = vmatprep.subr.bf16.mxu0 %v7808_v34  ;;  %v2493_v52 = vsub.f32 %v6642_v41, %v7868_v5  ;;  %v2426_v33 = vand.u32 4294901760, %v2425_v32  ;;  %v7869_v44 = vand.u32 4294901760, %v6651_v55 }
 0x4ed   : > { %v2435_v11 = vand.u32 4294901760, %v2434_v16  ;;  %v2501_v28 = vand.u32 4294901760, %v2500_v18  ;;  %v5456_v53 = vpack.c.bf16 %v2487_v50, %v2480_v54  ;;  %v2441_v38 = vand.u32 4294901760, %v2440_v27 }
 0x4ee   : > { %2412 = vmatmul.mubr.f32.gmra.mrb[6].mxu0 %v2411_v63  ;;  %v2494_v26 = vand.u32 4294901760, %v2493_v52  ;;  %v2528_v29 = vsub.f32 %v6651_v55, %v7869_v44  ;;  %v7870_v63 = vand.u32 4294901760, %v6664_v51  ;;  %v7871_v16 = vand.u32 4294901760, %v6679_v2 }
 0x4ef   : > { %5454 = vmatpush1.bf16.msra.mxu0 %v5453_v3  ;;  %2421 = vmatprep.mubr.f32.mxu0 %v2420_v9  ;;  %v7872_v54 = vand.u32 4294901760, %v6694_v21  ;;  %v7873_v27 = vand.u32 4294901760, %v6712_v49 }
 0x4f0   : > { %5455 = vmatprep.subr.bf16.mxu0 %v7808_v34  ;;  %v2521_v32 = vsub.f32 %v6664_v51, %v7870_v63  ;;  %v5459_v9 = vpack.c.bf16 %v2501_v28, %v2494_v26  ;;  %v2542_v50 = vsub.f32 %v6679_v2, %v7871_v16  ;;  %v2529_v5 = vand.u32 4294901760, %v2528_v29 }
 0x4f1   : > { %v2535_v18 = vsub.f32 %v6694_v21, %v7872_v54  ;;  %v7874_v28 = vand.u32 4294901760, %v6724_v47 }
 0x4f2   : > { %2427 = vmatmul.mubr.f32.gmra.mrb[8].mxu0 %v2426_v33  ;;  %v2522_v52 = vand.u32 4294901760, %v2521_v32  ;;  %v2543_v3 = vand.u32 4294901760, %v2542_v50  ;;  %v7876_v32 = vand.u32 4294901760, %v6761_v46 }
 0x4f3   : > { %5457 = vmatpush1.bf16.msra.mxu0 %v5456_v53  ;;  %2436 = vmatprep.mubr.f32.mxu0 %v2435_v11  ;;  %v2536_v33 = vand.u32 4294901760, %v2535_v18  ;;  %v2556_v11 = vsub.f32 %v6712_v49, %v7873_v27  ;;  %v2549_v26 = vsub.f32 %v6724_v47, %v7874_v28 }
 0x4f4   : > { %5458 = vmatprep.subr.bf16.mxu0 %v7808_v34  ;;  %v5465_v53 = vpack.c.bf16 %v2529_v5, %v2522_v52  ;;  %v5477_v5 = vpack.c.bf16 %v6583_v37, %v6588_v61  ;;  %v5480_v52 = vpack.c.bf16 %v6594_v23, %v6600_v31  ;;  %v5483_v37 = vpack.c.bf16 %v6612_v24, %v6618_v43 }
 0x4f5   : > { %v2557_v44 = vand.u32 4294901760, %v2556_v11  ;;  %v2550_v29 = vand.u32 4294901760, %v2549_v26  ;;  %v5486_v61 = vpack.c.bf16 %v6627_v25, %v6642_v41  ;;  %v7877_v23 = vpack.c.bf16 %v6532_v17, %v6536_v60  ;;  %v2269_v17 = vld [vmem:[%s7684_s6 + $0x8] sm:$0xff]  ;;  %v2271_v60 = vld [vmem:[%s7684_s6 + $0x18] sm:$0xff] }
 0x4f6   : > { %2442 = vmatmul.mubr.f32.gmra.mrb[10].mxu0 %v2441_v38  ;;  %v5468_v38 = vpack.c.bf16 %v2543_v3, %v2536_v33  ;;  %v5492_v31 = vpack.c.bf16 %v6651_v55, %v6664_v51  ;;  %v5495_v24 = vpack.c.bf16 %v6679_v2, %v6694_v21  ;;  %v5498_v43 = vpack.c.bf16 %v6712_v49, %v6724_v47  ;;  %v7884_v55 = vld [vmem:[#allocation13_spill] sm:$0xff]  ;;  %v7887_v2 = vld [vmem:[#allocation14_spill] sm:$0xff]  ;;  %v7889_v21 = vld [vmem:[#allocation15_spill] sm:$0xff] }
 0x4f7   : > { %5460 = vmatpush1.bf16.msra.mxu0 %v5459_v9  ;;  %2602 = vmatprep.mubr.f32.mxu0 %v6562_v19  ;;  %v2563_v9 = vsub.f32 %v6761_v46, %v7876_v32  ;;  %v5471_v54 = vpack.c.bf16 %v2557_v44, %v2550_v29  ;;  %v5501_v25 = vpack.c.bf16 %v6750_v48, %v6761_v46  ;;  %v7878_v46 = vand.u32 4294901760, %v6566_v42 }
 0x4f8   : > { %5461 = vmatprep.subr.bf16.mxu0 %v7808_v34  ;;  %2279 = vperm.xlu1 %5941, %v2269_v17   ;;  %v7880_v47 = vand.u32 4294901760, %v6668_v6  ;;  %v7882_v41 = vand.u32 4294901760, %v6701_v30  ;;  %v7883_v49 = vand.u32 4294901760, %v6728_v15  ;;  %v7885_v51 = vand.u32 4294901760, %v6737_v45 }
 0x4f9   : > { %v2564_v50 = vand.u32 4294901760, %v2563_v9 }
 0x4fb   : > { %5463 = vmatpush1.bf16.msra.mxu0 %v6550_v0  ;;  %v7875_v0 = vand.u32 4294901760, %v6750_v48 }
 0x4fc   : > { %5464 = vmatprep.subr.bf16.mxu0 %v7808_v34  ;;  %2289 = vperm.xlu1 %5941, %v2271_v60  }
 0x4fd   : > { %v2570_v63 = vsub.f32 %v6750_v48, %v7875_v0  ;;  %v7881_v48 = vld [vmem:[#allocation12_spill] sm:$0xff] }
 0x4ff   : > { %5466 = vmatpush1.bf16.msra.mxu0 %v5465_v53  ;;  %v2571_v16 = vand.u32 4294901760, %v2570_v63 }
 0x500   : > { %5467 = vmatprep.subr.bf16.mxu0 %v7808_v34 }
 0x501   : > { %v5474_v18 = vpack.c.bf16 %v2571_v16, %v2564_v50 }
 0x503   : > { %5469 = vmatpush1.bf16.msra.mxu0 %v5468_v38 }
 0x504   : > { %5470 = vmatprep.subr.bf16.mxu0 %v7808_v34 }
 0x507   : > { %5472 = vmatpush1.bf16.msra.mxu0 %v5471_v54 }
 0x508   : > { %5473 = vmatprep.subr.bf16.mxu0 %v7808_v34 }
 0x50b   : > { %5475 = vmatpush1.bf16.msra.mxu0 %v5474_v18 }
 0x50c   : > { %5476 = vmatprep.subr.bf16.mxu0 %v7808_v34 }
 0x50e   : > { %2604 = vmatmul.mubr.f32.vlgmr.msra.gmra.mrb[4].mxu0 %v6645_v39 }
 0x50f   : > { %5478 = vmatpush1.bf16.msra.mxu0 %v5477_v5  ;;  %2609 = vmatprep.mubr.f32.mxu0 %v6670_v7 }
 0x510   : > { %5479 = vmatprep.subr.bf16.mxu0 %v7808_v34 }
 0x512   : > { %2611 = vmatmul.mubr.f32.gmra.mrb[6].mxu0 %v6697_v62 }
 0x513   : > { %5481 = vmatpush1.bf16.msra.mxu0 %v5480_v52  ;;  %2616 = vmatprep.mubr.f32.mxu0 %v6705_v36 }
 0x514   : > { %5482 = vmatprep.subr.bf16.mxu0 %v7808_v34 }
 0x516   : > { %2618 = vmatmul.mubr.f32.gmra.mrb[8].mxu0 %v6732_v57 }
 0x517   : > { %5484 = vmatpush1.bf16.msra.mxu0 %v5483_v37  ;;  %2623 = vmatprep.mubr.f32.mxu0 %v6739_v8 }
 0x518   : > { %5485 = vmatprep.subr.bf16.mxu0 %v7808_v34 }
 0x51a   : > { %2625 = vmatmul.mubr.f32.gmra.mrb[10].mxu0 %v6771_v56 }
 0x51b   : > { %5487 = vmatpush1.bf16.msra.mxu0 %v5486_v61  ;;  %2732 = vmatprep.mubr.f32.mxu0 %v6566_v42  ;;  %v7879_v42 = vld [vmem:[#allocation18_spill] sm:$0xff] }
 0x51c   : > { %5488 = vmatprep.subr.bf16.mxu0 %v7808_v34 }
 0x51f   : > { %5490 = vmatpush1.bf16.msra.mxu0 %v7877_v23 }
 0x520   : > { %5491 = vmatprep.subr.bf16.mxu0 %v7808_v34 }
 0x523   : > { %5493 = vmatpush1.bf16.msra.mxu0 %v5492_v31 }
 0x524   : > { %5494 = vmatprep.subr.bf16.mxu0 %v7808_v34 }
 0x527   : > { %5496 = vmatpush1.bf16.msra.mxu0 %v5495_v24 }
 0x528   : > { %5497 = vmatprep.subr.bf16.mxu0 %v7808_v34 }
 0x52b   : > { %5499 = vmatpush1.bf16.msra.mxu0 %v5498_v43 }
 0x52c   : > { %5500 = vmatprep.subr.bf16.mxu0 %v7808_v34 }
 0x52f   : > { %5502 = vmatpush1.bf16.msra.mxu0 %v5501_v25 }
 0x530   : > { %5503 = vmatprep.subr.bf16.mxu0 %v7808_v34 }
 0x532   : > { %2735 = vmatmul.mubr.f32.vlgmr.msra.gmra.mrb[4].mxu0 %v6668_v6  ;;  %v7886_v6 = vand.u32 4294901760, %v6769_v35 }
 0x533   : > { %5505 = vmatpush1.bf16.msra.mxu0 %v6586_v59  ;;  %2741 = vmatprep.mubr.f32.mxu0 %v6701_v30  ;;  %v7888_v30 = vand.u32 4294901760, %v6786_v12 }
 0x534   : > { %5506 = vmatprep.subr.bf16.mxu0 %v7808_v34 }
 0x536   : > { %2744 = vmatmul.mubr.f32.gmra.mrb[6].mxu0 %v6728_v15  ;;  %v7890_v15 = vld [vmem:[#allocation3_spill] sm:$0xff] }
 0x537   : > { %5508 = vmatpush1.bf16.msra.mxu0 %v6598_v58  ;;  %2750 = vmatprep.mubr.f32.mxu0 %v6737_v45  ;;  %v7892_v45 = vld [vmem:[#allocation16_spill] sm:$0xff] }
 0x538   : > { %5509 = vmatprep.subr.bf16.mxu0 %v7808_v34 }
 0x53a   : > { %2753 = vmatmul.mubr.f32.gmra.mrb[8].mxu0 %v6769_v35  ;;  %v7891_v35 = vld [vmem:[#allocation11_spill] sm:$0xff] }
 0x53b   : > { %5511 = vmatpush1.bf16.msra.mxu0 %v6616_v13  ;;  %2759 = vmatprep.mubr.f32.mxu0 %v6786_v12  ;;  %v7893_v12 = vld [vmem:[#allocation17_spill] sm:$0xff] }
 0x53c   : > { %5512 = vmatprep.subr.bf16.mxu0 %v7808_v34 }
 0x53e   : > { %2762 = vmatmul.mubr.f32.gmra.mrb[10].mxu0 %v6808_v10  ;;  %v7894_v10 = vld [vmem:[#allocation19_spill] sm:$0xff] }
 0x53f   : > { %5514 = vmatpush1.bf16.msra.mxu0 %v6640_v40  ;;  %2852 = vmatprep.mubr.f32.mxu0 %v7878_v46 }
 0x540   : > { %5515 = vmatprep.subr.bf16.mxu0 %v7808_v34 }
 0x543   : > { %5517 = vmatpush1.bf16.msra.mxu0 %v6534_v14 }
 0x544   : > { %5518 = vmatprep.subr.bf16.mxu0 %v7808_v34 }
 0x547   : > { %5520 = vmatpush1.bf16.msra.mxu0 %v6692_v20 }
 0x548   : > { %5521 = vmatprep.subr.bf16.mxu0 %v7808_v34 }
 0x54b   : > { %5523 = vmatpush1.bf16.msra.mxu0 %v6722_v4 }
 0x54c   : > { %5524 = vmatprep.subr.bf16.mxu0 %v7808_v34 }
 0x54f   : > { %5526 = vmatpush1.bf16.msra.mxu0 %v6759_v1 }
 0x550   : > { %5527 = vmatprep.subr.bf16.mxu0 %v7808_v34 }
 0x553   : > { %5529 = vmatpush1.bf16.msra.mxu0 %v7879_v42 }
 0x554   : > { %5530 = vmatprep.subr.bf16.mxu0 %v7808_v34 }
 0x556   : > { %2856 = vmatmul.mubr.f32.vlgmr.msra.gmra.mrb[4].mxu0 %v7880_v47 }
 0x557   : > { %5532 = vmatpush1.bf16.msra.mxu0 %v7881_v48  ;;  %2863 = vmatprep.mubr.f32.mxu0 %v7882_v41 }
 0x558   : > { %5533 = vmatprep.subr.bf16.mxu0 %v7808_v34 }
 0x55a   : > { %2867 = vmatmul.mubr.f32.gmra.mrb[6].mxu0 %v7883_v49  ;;  %v3165_v49 = vld [vmem:[%s7685_s7 + $0x8] sm:$0xff] }
 0x55b   : > { %5535 = vmatpush1.bf16.msra.mxu0 %v7884_v55  ;;  %2874 = vmatprep.mubr.f32.mxu0 %v7885_v51  ;;  %v7087_v55 = vand.u32 4294901760, %v3165_v49 }
 0x55c   : > { %5536 = vmatprep.subr.bf16.mxu0 %v7808_v34 }
 0x55d   : > { %v7090_v51 = vsub.f32 %v3165_v49, %v7087_v55 }
 0x55e   : > { %2878 = vmatmul.mubr.f32.gmra.mrb[8].mxu0 %v7886_v6 }
 0x55f   : > { %5538 = vmatpush1.bf16.msra.mxu0 %v7887_v2  ;;  %2885 = vmatprep.mubr.f32.mxu0 %v7888_v30  ;;  %7896 = vst [vmem:[#allocation12_spill] sm:$0xff] %v7090_v51  ;;  %v7749_v6 = vand.u32 4294901760, %v7090_v51 }
 0x560   : > { %5539 = vmatprep.subr.bf16.mxu0 %v7808_v34 }
 0x561   : > { %v3374_v2 = vsub.f32 %v7090_v51, %v7749_v6 }
 0x562   : > { %2889 = vmatmul.mubr.f32.gmra.mrb[10].mxu0 %v2439_v22 }
 0x563   : > { %5541 = vmatpush1.bf16.msra.mxu0 %v7889_v21  ;;  %3013 = vmatprep.mubr.f32.mxu0 %v6562_v19  ;;  %v3375_v30 = vand.u32 4294901760, %v3374_v2 }
 0x564   : > { %5542 = vmatprep.subr.bf16.mxu0 %v7808_v34 }
 0x565   : > { %3376 = vmatprep.mubr.f32.mxu1 %v3375_v30  ;;  %v7902_v30 = vld [vmem:[#allocation9_spill] sm:$0xff] }
 0x567   : > { %5544 = vmatpush1.bf16.msra.mxu0 %v7890_v15  ;;  %v7897_v15 = vld [vmem:[#allocation4_spill] sm:$0xff] }
 0x568   : > { %5545 = vmatprep.subr.bf16.mxu0 %v7808_v34 }
 0x56b   : > { %5547 = vmatpush1.bf16.msra.mxu0 %v7891_v35 }
 0x56c   : > { %5548 = vmatprep.subr.bf16.mxu0 %v7808_v34 }
 0x56f   : > { %5550 = vmatpush1.bf16.msra.mxu0 %v7892_v45 }
 0x570   : > { %5551 = vmatprep.subr.bf16.mxu0 %v7808_v34 }
 0x573   : > { %5553 = vmatpush1.bf16.msra.mxu0 %v7893_v12 }
 0x574   : > { %5554 = vmatprep.subr.bf16.mxu0 %v7808_v34 }
 0x577   : > { %5556 = vmatpush1.bf16.msra.mxu0 %v7894_v10 }
 0x578   : > { %5557 = vmatprep.subr.bf16.mxu0 %v7808_v34 }
 0x57a   : > { %3015 = vmatmul.mubr.f32.vlgmr.msra.gmra.mrb[4].mxu0 %v6645_v39 }
 0x57b   : > { %5559 = vmatpush1.bf16.msra.mxu0 %v6586_v59  ;;  %3020 = vmatprep.mubr.f32.mxu0 %v6670_v7 }
 0x57c   : > { %5560 = vmatprep.subr.bf16.mxu0 %v7808_v34 }
 0x57e   : > { %3022 = vmatmul.mubr.f32.gmra.mrb[6].mxu0 %v6697_v62 }
 0x57f   : > { %5562 = vmatpush1.bf16.msra.mxu0 %v6598_v58  ;;  %3027 = vmatprep.mubr.f32.mxu0 %v6705_v36  ;;  %v2280_v58 = vpop.permute.xlu1 %2279 }
 0x580   : > { %5563 = vmatprep.subr.bf16.mxu0 %v7808_v34 }
 0x582   : > { %3029 = vmatmul.mubr.f32.gmra.mrb[8].mxu0 %v6732_v57 }
 0x583   : > { %5565 = vmatpush1.bf16.msra.mxu0 %v6616_v13  ;;  %3034 = vmatprep.mubr.f32.mxu0 %v6739_v8  ;;  %v2290_v11 = vpop.permute.xlu1 %2289 }
 0x584   : > { %5566 = vmatprep.subr.bf16.mxu0 %v7808_v34 }
 0x586   : > { %3036 = vmatmul.mubr.f32.gmra.mrb[10].mxu0 %v6771_v56 }
 0x587   : > { %5568 = vmatpush1.bf16.msra.mxu0 %v6640_v40  ;;  %3124 = vmatprep.mubr.f32.mxu0 %v6562_v19 }
 0x588   : > { %5569 = vmatprep.subr.bf16.mxu0 %v7808_v34 }
 0x58b   : > { %5571 = vmatpush1.bf16.msra.mxu0 %v6534_v14  ;;  %v2275_v14 = vpop.permute.xlu0 %2274 }
 0x58c   : > { %5572 = vmatprep.subr.bf16.mxu0 %v7808_v34 }
 0x58f   : > { %5574 = vmatpush1.bf16.msra.mxu0 %v6692_v20 }
 0x590   : > { %5575 = vmatprep.subr.bf16.mxu0 %v7808_v34 }
 0x593   : > { %5577 = vmatpush1.bf16.msra.mxu0 %v6722_v4 }
 0x594   : > { %5578 = vmatprep.subr.bf16.mxu0 %v7808_v34 }
 0x597   : > { %5580 = vmatpush1.bf16.msra.mxu0 %v6759_v1 }
 0x598   : > { %5581 = vmatprep.subr.bf16.mxu0 %v7808_v34 }
 0x59b   : > { %5583 = vmatpush1.bf16.msra.mxu0 %v7879_v42 }
 0x59e   : > { %3126 = vmatmul.mubr.f32.vlgmr.msra.gmra.mrb[4].mxu0 %v6645_v39 }
 0x59f   : > { %3131 = vmatprep.mubr.f32.mxu0 %v6670_v7 }
 0x5a2   : > { %3133 = vmatmul.mubr.f32.gmra.mrb[6].mxu0 %v6697_v62 }
 0x5a3   : > { %3138 = vmatprep.mubr.f32.mxu0 %v6705_v36 }
 0x5a6   : > { %3140 = vmatmul.mubr.f32.gmra.mrb[8].mxu0 %v6732_v57 }
 0x5a7   : > { %3145 = vmatprep.mubr.f32.mxu0 %v6739_v8 }
 0x5aa   : > { %3147 = vmatmul.mubr.f32.gmra.mrb[10].mxu0 %v6771_v56  ;;  %v2285_v56 = vpop.permute.xlu0 %2284 }
 0x5ab   : > { %3771 = vmatprep.mubr.f32.mxu0 %v7090_v51 }
 0x671   : > { %v3127_v19 = vpop.f32.mrb[4].mxu0 }
 0x672   : > { %v5826_v59 = vadd.f32 %v3127_v19, %v2275_v14  ;;  %v3129_v34 = vpop.f32.mrb[5].mxu0 }
 0x674   : > { %vm3152_vm2 = vcmp.gt.f32.partialorder %v5826_v59, 0.0  ;;  %v3156_v4 = vmul.f32 0.01, %v5826_v59 }
 0x675   : > { %v3134_v13 = vpop.f32.mrb[6].mxu0 }
 0x676   : > { %v7007_v40 = vsel %vm3152_vm2, %v5826_v59, %v3156_v4  ;;  %v5827_v39 = vadd.f32 %v3134_v13, %v2280_v58  ;;  %v3136_v1 = vpop.f32.mrb[7].mxu0 }
 0x677   : > { %3170 = vrot.lane.b32.xlu0 %v7007_v40, %s5957_s28  ;;  %v3324_v7 = vand.u32 4294901760, %v7007_v40 }
 0x678   : > { %vm3153_vm3 = vcmp.gt.f32.partialorder %v5827_v39, 0.0  ;;  %v3157_v57 = vmul.f32 0.01, %v5827_v39 }
 0x679   : > { %v3141_v20 = vpop.f32.mrb[8].mxu0  ;;  %v3516_v62 = vsub.f32 %v7007_v40, %v3324_v7 }
 0x67a   : > { %v7013_v36 = vsel %vm3153_vm3, %v5827_v39, %v3157_v57  ;;  %v5828_v8 = vadd.f32 %v3141_v20, %v2285_v56  ;;  %v3143_v22 = vpop.f32.mrb[9].mxu0  ;;  %v3168_v57 = vld [vmem:[%s7685_s7 + $0x20] sm:$0xff]  ;;  %v3167_v56 = vld [vmem:[%s7685_s7 + $0x18] sm:$0xff]  ;;  %v7898_v20 = vld [vmem:[#allocation8_spill] sm:$0xff] }
 0x67b   : > { %3172 = vrot.lane.b32.xlu1 %v7013_v36, %s5957_s28  ;;  %3218 = vrot.lane.b32.xlu0 %v7007_v40, %s5961_s12  ;;  %v3327_v3 = vand.u32 4294901760, %v7013_v36  ;;  %v3517_v33 = vand.u32 4294901760, %v3516_v62 }
 0x67c   : > { %vm3154_vm4 = vcmp.gt.f32.partialorder %v5828_v8, 0.0  ;;  %v3158_v27 = vmul.f32 0.01, %v5828_v8 }
 0x67d   : > { %v3148_v28 = vpop.f32.mrb[10].mxu0  ;;  %v7020_v26 = vpack.c.bf16 %v3327_v3, %v3324_v7  ;;  %v3523_v53 = vsub.f32 %v7013_v36, %v3327_v3  ;;  %v3518_v32 = vsub.f32 %v3516_v62, %v3517_v33  ;;  %v3164_v7 = vld [vmem:[%s7685_s7] sm:$0xff]  ;;  %v7134_v3 = vand.u32 4294901760, %v3168_v57 }
 0x67e   : > { %v7023_v38 = vsel %vm3154_vm4, %v5828_v8, %v3158_v27  ;;  %v5829_v44 = vadd.f32 %v3148_v28, %v2290_v11  ;;  %v3150_v29 = vpop.f32.mrb[11].mxu0  ;;  %v7132_v22 = vand.u32 4294901760, %v3164_v7 }
 0x67f   : > { %3220 = vrot.lane.b32.xlu1 %v7013_v36, %s5961_s12  ;;  %3182 = vrot.lane.b32.xlu0 %v7007_v40, %s5958_s29  ;;  %v5648_v0 = vpack.c.bf16 %v3523_v53, %v3516_v62  ;;  %v3330_v63 = vand.u32 4294901760, %v7023_v38  ;;  %v3524_v9 = vand.u32 4294901760, %v3523_v53  ;;  %v3519_v37 = vand.u32 4294901760, %v3518_v32  ;;  %7899 = vst [vmem:[#allocation13_spill] sm:$0xff] %v7134_v3 }
 0x680   : > { %vm3155_vm5 = vcmp.gt.f32.partialorder %v5829_v44, 0.0  ;;  %v3159_v16 = vmul.f32 0.01, %v5829_v44  ;;  %5585 = vmatprep.subr.bf16.mxu1 %v7020_v26 }
 0x681   : > { %5649 = vmatprep.subr.bf16.mxu0 %v5648_v0  ;;  %v7032_v50 = vsub.f32 %v7023_v38, %v3330_v63  ;;  %v3525_v54 = vsub.f32 %v3523_v53, %v3524_v9  ;;  %v7034_v18 = vpack.c.bf16 %v3524_v9, %v3517_v33  ;;  %v7136_v33 = vand.u32 4294901760, %v3167_v56  ;;  %v7901_v0 = vld [vmem:[#allocation5_spill] sm:$0xff] }
 0x682   : > { %v3163_v5 = vsel %vm3155_vm5, %v5829_v44, %v3159_v16  ;;  %v7143_v53 = vsub.f32 %v3164_v7, %v7132_v22 }
 0x683   : > { %3184 = vrot.lane.b32.xlu1 %v7013_v36, %s5958_s29  ;;  %3230 = vrot.lane.b32.xlu0 %v7007_v40, %s5962_s13  ;;  %v3333_v52 = vand.u32 4294901760, %v3163_v5  ;;  %v3526_v61 = vand.u32 4294901760, %v3525_v54  ;;  %v3531_v23 = vand.u32 4294901760, %v7032_v50  ;;  %7900 = vst [vmem:[#allocation14_spill] sm:$0xff] %v7136_v33  ;;  %v7149_v44 = vsub.f32 %v3167_v56, %v7136_v33 }
 0x685   : > { %v7041_v31 = vpack.c.bf16 %v3333_v52, %v3330_v63  ;;  %v7043_v24 = vsub.f32 %v3163_v5, %v3333_v52  ;;  %v7045_v43 = vpack.c.bf16 %v3526_v61, %v3519_v37  ;;  %v3532_v60 = vsub.f32 %v7032_v50, %v3531_v23 }
 0x686   : > { %v7746_v52 = vand.u32 4294901760, %v7149_v44 }
 0x687   : > { %7895 = vst [vmem:[#allocation18_spill] sm:$0xff] %v7041_v31  ;;  %3232 = vrot.lane.b32.xlu1 %v7013_v36, %s5962_s13  ;;  %3194 = vrot.lane.b32.xlu0 %v7007_v40, %s5959_s30  ;;  %v5652_v17 = vpack.c.bf16 %v7043_v24, %v7032_v50  ;;  %v3538_v25 = vand.u32 4294901760, %v7043_v24  ;;  %v3533_v47 = vand.u32 4294901760, %v3532_v60  ;;  %v7748_v50 = vand.u32 4294901760, %v7143_v53 }
 0x688   : > { %v7182_v2 = vsub.f32 %v7149_v44, %v7746_v52 }
 0x689   : > { %v3539_v46 = vsub.f32 %v7043_v24, %v3538_v25  ;;  %v7056_v42 = vpack.c.bf16 %v3538_v25, %v3531_v23 }
 0x68b   : > { %3196 = vrot.lane.b32.xlu1 %v7013_v36, %s5959_s30  ;;  %3242 = vrot.lane.b32.xlu0 %v7007_v40, %s5963_s18  ;;  %v3540_v48 = vand.u32 4294901760, %v3539_v46  ;;  %v7170_v46 = vsub.f32 %v7143_v53, %v7748_v50 }
 0x68d   : > { %v7062_v41 = vpack.c.bf16 %v3540_v48, %v3533_v47 }
 0x68f   : > { %3244 = vrot.lane.b32.xlu1 %v7013_v36, %s5963_s18  ;;  %3206 = vrot.lane.b32.xlu0 %v7007_v40, %s5960_s11 }
 0x693   : > { %3208 = vrot.lane.b32.xlu1 %v7013_v36, %s5960_s11  ;;  %3174 = vrot.lane.b32.xlu0 %v7023_v38, %s5957_s28 }
 0x697   : > { %3176 = vrot.lane.b32.xlu1 %v3163_v5, %s5957_s28  ;;  %3222 = vrot.lane.b32.xlu0 %v7023_v38, %s5961_s12 }
 0x69b   : > { %3224 = vrot.lane.b32.xlu1 %v3163_v5, %s5961_s12  ;;  %3186 = vrot.lane.b32.xlu0 %v7023_v38, %s5958_s29 }
 0x69f   : > { %3188 = vrot.lane.b32.xlu1 %v3163_v5, %s5958_s29  ;;  %3234 = vrot.lane.b32.xlu0 %v7023_v38, %s5962_s13 }
 0x6a3   : > { %3236 = vrot.lane.b32.xlu1 %v3163_v5, %s5962_s13  ;;  %3198 = vrot.lane.b32.xlu0 %v7023_v38, %s5959_s30 }
 0x6a7   : > { %3200 = vrot.lane.b32.xlu1 %v3163_v5, %s5959_s30  ;;  %3246 = vrot.lane.b32.xlu0 %v7023_v38, %s5963_s18 }
 0x6ab   : > { %3248 = vrot.lane.b32.xlu1 %v3163_v5, %s5963_s18  ;;  %3210 = vrot.lane.b32.xlu0 %v7023_v38, %s5960_s11 }
 0x6af   : > { %3212 = vrot.lane.b32.xlu1 %v3163_v5, %s5960_s11  ;;  %3254 = vrot.lane.b32.xlu0 %v7007_v40, %s5964_s9 }
 0x6b3   : > { %3256 = vrot.lane.b32.xlu1 %v7013_v36, %s5964_s9  ;;  %3258 = vrot.lane.b32.xlu0 %v7023_v38, %s5964_s9  ;;  %v7146_v38 = vsub.f32 %v3168_v57, %v7134_v3 }
 0x6b5   : > { %v7747_v54 = vand.u32 4294901760, %v7146_v38 }
 0x6b7   : > { %3260 = vrot.lane.b32.xlu1 %v3163_v5, %s5964_s9  ;;  %v7175_v47 = vsub.f32 %v7146_v38, %v7747_v54 }
 0x6e9   : > { %v3171_v21 = vpop.permute.xlu0 %3170 }
 0x6ea   : > { %v3178_v35 = vmul.f32 %v3171_v21, %v7897_v15 }
 0x6ec   : > { %v3276_v10 = vand.u32 4294901760, %v3178_v35 }
 0x6ed   : > { %v3173_v45 = vpop.permute.xlu1 %3172  ;;  %v3219_v12 = vpop.permute.xlu0 %3218 }
 0x6ee   : > { %v3179_v14 = vmul.f32 %v3173_v45, %v7897_v15  ;;  %v7113_v4 = vsub.f32 %v3178_v35, %v3276_v10  ;;  %v3226_v62 = vmul.f32 %v3219_v12, %v7898_v20 }
 0x6f0   : > { %v3279_v19 = vand.u32 4294901760, %v3179_v14  ;;  %v3336_v27 = vand.u32 4294901760, %v3226_v62  ;;  %v3405_v5 = vand.u32 4294901760, %v7113_v4 }
 0x6f1   : > { %v3221_v59 = vpop.permute.xlu1 %3220  ;;  %v3183_v34 = vpop.permute.xlu0 %3182 }
 0x6f2   : > { %v7115_v58 = vpack.c.bf16 %v3279_v19, %v3276_v10  ;;  %v3411_v13 = vsub.f32 %v3179_v14, %v3279_v19  ;;  %v3227_v29 = vmul.f32 %v3221_v59, %v7898_v20  ;;  %v3190_v63 = vmul.f32 %v3183_v34, %v7901_v0 }
 0x6f3   : > { %v7153_v32 = vsub.f32 %v3226_v62, %v3336_v27  ;;  %v3406_v48 = vsub.f32 %v7113_v4, %v3405_v5 }
 0x6f4   : > { %v5650_v40 = vpack.c.bf16 %v3411_v13, %v7113_v4  ;;  %5587 = vmatpush3.bf16.msra.mxu1 %v7115_v58  ;;  %v3412_v37 = vand.u32 4294901760, %v3411_v13  ;;  %v3339_v61 = vand.u32 4294901760, %v3227_v29  ;;  %v3288_v23 = vand.u32 4294901760, %v3190_v63 }
 0x6f5   : > { %v3185_v39 = vpop.permute.xlu1 %3184  ;;  %v3231_v1 = vpop.permute.xlu0 %3230  ;;  %5589 = vmatprep.subr.bf16.mxu1 %v7041_v31  ;;  %v7751_v24 = vand.u32 4294901760, %v7153_v32 }
 0x6f6   : > { %5651 = vmatpush3.bf16.msra.mxu0 %v5650_v40  ;;  %v7185_v21 = vmul.f32 %v3231_v1, %v7902_v30  ;;  %v3413_v35 = vsub.f32 %v3411_v13, %v3412_v37  ;;  %v7187_v45 = vsub.f32 %v3227_v29, %v3339_v61  ;;  %v7189_v12 = vsub.f32 %v3190_v63, %v3288_v23 }
 0x6f7   : > { %5653 = vmatprep.subr.bf16.mxu0 %v5652_v17  ;;  %v3191_v17 = vmul.f32 %v3185_v39, %v7901_v0  ;;  %v7195_v34 = vsub.f32 %v7153_v32, %v7751_v24  ;;  %v3407_v40 = vand.u32 4294901760, %v3406_v48  ;;  %v7202_v56 = vpack.c.bf16 %v3339_v61, %v3336_v27 }
 0x6f8   : > { %v7753_v7 = vand.u32 4294901760, %v7185_v21  ;;  %v7204_v62 = vpack.c.bf16 %v3412_v37, %v3405_v5  ;;  %v3414_v29 = vand.u32 4294901760, %v3413_v35  ;;  %v7752_v63 = vand.u32 4294901760, %v7187_v45 }
 0x6f9   : > { %v3233_v36 = vpop.permute.xlu1 %3232  ;;  %v7130_v8 = vpop.permute.xlu0 %3194  ;;  %v3291_v10 = vand.u32 4294901760, %v3191_v17  ;;  %7903 = vst [vmem:[#allocation15_spill] sm:$0xff] %v7202_v56  ;;  %v5656_v50 = vpack.c.bf16 %v7187_v45, %v7153_v32 }
 0x6fa   : > { %v7242_v1 = vpack.c.bf16 %v3414_v29, %v3407_v40 }
 0x6fb   : > { %v7208_v48 = vpack.c.bf16 %v3291_v10, %v3288_v23  ;;  %v7214_v61 = vsub.f32 %v3191_v17, %v3291_v10  ;;  %v7225_v23 = vsub.f32 %v7185_v21, %v7753_v7 }
 0x6fd   : > { %v7138_v11 = vpop.permute.xlu1 %3196  ;;  %v7140_v28 = vpop.permute.xlu0 %3242  ;;  %7904 = vst [vmem:[#allocation3_spill] sm:$0xff] %v7208_v48  ;;  %v5658_v4 = vpack.c.bf16 %v7214_v61, %v7189_v12 }
 0x701   : > { %v7155_v9 = vpop.permute.xlu1 %3244  ;;  %v7157_v16 = vpop.permute.xlu0 %3206 }
 0x705   : > { %v7165_v60 = vpop.permute.xlu1 %3208  ;;  %v3175_v25 = vpop.permute.xlu0 %3174 }
 0x706   : > { %v3180_v49 = vmul.f32 %v3175_v25, %v7897_v15  ;;  %v7750_v25 = vand.u32 4294901760, %v7189_v12 }
 0x708   : > { %v3282_v39 = vand.u32 4294901760, %v3180_v49  ;;  %v7232_v17 = vsub.f32 %v7189_v12, %v7750_v25 }
 0x709   : > { %v3177_v14 = vpop.permute.xlu1 %3176  ;;  %v3223_v19 = vpop.permute.xlu0 %3222 }
 0x70a   : > { %v3181_v13 = vmul.f32 %v3177_v14, %v7897_v15  ;;  %v3228_v57 = vmul.f32 %v3223_v19, %v7898_v20  ;;  %v3239_v15 = vmul.f32 %v3233_v36, %v7902_v30  ;;  %v7216_v5 = vsub.f32 %v3180_v49, %v3282_v39  ;;  %v7906_v49 = vld [vmem:[#allocation6_spill] sm:$0xff] }
 0x70b   : > { %v3202_v10 = vmul.f32 %v7130_v8, %v7906_v49  ;;  %v7247_v8 = vsub.f32 %v7187_v45, %v7752_v63 }
 0x70c   : > { %v3285_v52 = vand.u32 4294901760, %v3181_v13  ;;  %v3342_v36 = vand.u32 4294901760, %v3228_v57 }
 0x70d   : > { %v3225_v14 = vpop.permute.xlu1 %3224  ;;  %v3187_v54 = vpop.permute.xlu0 %3186 }
 0x70e   : > { %v7218_v37 = vpack.c.bf16 %v3285_v52, %v3282_v39  ;;  %v7220_v35 = vsub.f32 %v3181_v13, %v3285_v52  ;;  %v3229_v19 = vmul.f32 %v3225_v14, %v7898_v20  ;;  %v3192_v6 = vmul.f32 %v3187_v54, %v7901_v0 }
 0x70f   : > { %v3203_v52 = vmul.f32 %v7138_v11, %v7906_v49  ;;  %v3351_v13 = vand.u32 4294901760, %v3239_v15  ;;  %v7253_v27 = vsub.f32 %v3228_v57, %v3342_v36  ;;  %v7908_v57 = vld [vmem:[#allocation10_spill] sm:$0xff] }
 0x710   : > { %7905 = vst [vmem:[#allocation11_spill] sm:$0xff] %v7218_v37  ;;  %v5654_v39 = vpack.c.bf16 %v7220_v35, %v7216_v5  ;;  %5591 = vmatpush3.bf16.msra.mxu1 %v7218_v37  ;;  %v3345_v20 = vand.u32 4294901760, %v3229_v19  ;;  %v3294_v59 = vand.u32 4294901760, %v3192_v6  ;;  %v3250_v63 = vmul.f32 %v7140_v28, %v7908_v57 }
 0x711   : > { %v3189_v14 = vpop.permute.xlu1 %3188  ;;  %v3235_v54 = vpop.permute.xlu0 %3234  ;;  %5593 = vmatprep.subr.bf16.mxu1 %v7202_v56  ;;  %v3303_v7 = vand.u32 4294901760, %v3203_v52  ;;  %v7263_v51 = vsub.f32 %v3239_v15, %v3351_v13 }
 0x712   : > { %v3193_v25 = vmul.f32 %v3189_v14, %v7901_v0  ;;  %5655 = vmatpush3.bf16.msra.mxu0 %v5654_v39  ;;  %v7255_v24 = vsub.f32 %v3229_v19, %v3345_v20  ;;  %v3240_v40 = vmul.f32 %v3235_v54, %v7902_v30  ;;  %v7258_v29 = vpack.c.bf16 %v3345_v20, %v3342_v36 }
 0x713   : > { %5657 = vmatprep.subr.bf16.mxu0 %v5656_v50  ;;  %v3300_v0 = vand.u32 4294901760, %v3202_v10  ;;  %v3251_v19 = vmul.f32 %v7155_v9, %v7908_v57  ;;  %v7270_v36 = vsub.f32 %v3192_v6, %v3294_v59  ;;  %v7284_v6 = vsub.f32 %v3203_v52, %v3303_v7 }
 0x714   : > { %7907 = vst [vmem:[#allocation16_spill] sm:$0xff] %v7258_v29  ;;  %v3297_v56 = vand.u32 4294901760, %v3193_v25  ;;  %5595 = vmatpush3.bf16.msra.mxu1 %v7208_v48  ;;  %v5660_v50 = vpack.c.bf16 %v7255_v24, %v7253_v27  ;;  %v3354_v9 = vand.u32 4294901760, %v3240_v40  ;;  %v5664_v52 = vpack.c.bf16 %v7263_v51, %v7225_v23 }
 0x715   : > { %v3237_v39 = vpop.permute.xlu1 %3236  ;;  %v3199_v14 = vpop.permute.xlu0 %3198  ;;  %5597 = vmatprep.subr.bf16.mxu1 %v7258_v29  ;;  %v7910_v29 = vand.u32 4294901760, %v7185_v21  ;;  %v7291_v28 = vsub.f32 %v3202_v10, %v3300_v0  ;;  %v3360_v10 = vand.u32 4294901760, %v3250_v63 }
 0x716   : > { %v7272_v20 = vpack.c.bf16 %v3297_v56, %v3294_v59  ;;  %v7274_v54 = vsub.f32 %v3193_v25, %v3297_v56  ;;  %v3241_v15 = vmul.f32 %v3237_v39, %v7902_v30  ;;  %5659 = vmatpush3.bf16.msra.mxu0 %v5658_v4  ;;  %v3204_v11 = vmul.f32 %v3199_v14, %v7906_v49  ;;  %v7912_v59 = vld [vmem:[#allocation7_spill] sm:$0xff] }
 0x717   : > { %5661 = vmatprep.subr.bf16.mxu0 %v5660_v50  ;;  %v7282_v48 = vpack.c.bf16 %v3351_v13, %v7910_v29  ;;  %v3215_v56 = vmul.f32 %v7165_v60, %v7912_v59  ;;  %v3363_v25 = vand.u32 4294901760, %v3251_v19  ;;  %v3214_v39 = vmul.f32 %v7157_v16, %v7912_v59 }
 0x718   : > { %7909 = vst [vmem:[#allocation17_spill] sm:$0xff] %v7272_v20  ;;  %v5662_v30 = vpack.c.bf16 %v7274_v54, %v7270_v36  ;;  %v3357_v4 = vand.u32 4294901760, %v3241_v15  ;;  %5599 = vmatpush3.bf16.msra.mxu1 %v7272_v20  ;;  %v7298_v60 = vpack.c.bf16 %v3303_v7, %v3300_v0  ;;  %v3306_v14 = vand.u32 4294901760, %v3204_v11 }
 0x719   : > { %7911 = vst [vmem:[#allocation19_spill] sm:$0xff] %v7282_v48  ;;  %v3201_v21 = vpop.permute.xlu1 %3200  ;;  %v3247_v13 = vpop.permute.xlu0 %3246  ;;  %5601 = vmatprep.subr.bf16.mxu1 %v7282_v48  ;;  %v7303_v20 = vsub.f32 %v3240_v40, %v3354_v9  ;;  %v5666_v48 = vpack.c.bf16 %v7284_v6, %v7291_v28  ;;  %v3315_v33 = vand.u32 4294901760, %v3215_v56  ;;  %v3554_v0 = vand.u32 4294901760, %v7247_v8 }
 0x71a   : > { %7913 = vst [vmem:[#allocation4_spill] sm:$0xff] %v7298_v60  ;;  %v7300_v29 = vsub.f32 %v3241_v15, %v3357_v4  ;;  %v3205_v50 = vmul.f32 %v3201_v21, %v7906_v49  ;;  %5663 = vmatpush3.bf16.msra.mxu0 %v5662_v30  ;;  %v3252_v16 = vmul.f32 %v3247_v13, %v7908_v57  ;;  %v3312_v49 = vand.u32 4294901760, %v3214_v39 }
 0x71b   : > { %5665 = vmatprep.subr.bf16.mxu0 %v5664_v52  ;;  %v7306_v37 = vpack.c.bf16 %v3357_v4, %v3354_v9  ;;  %v7312_v15 = vsub.f32 %v3251_v19, %v3363_v25  ;;  %v7915_v4 = vand.u32 4294901760, %v7153_v32  ;;  %v7916_v21 = vand.u32 4294901760, %v7187_v45 }
 0x71c   : > { %v3309_v7 = vand.u32 4294901760, %v3205_v50  ;;  %5603 = vmatpush3.bf16.msra.mxu1 %v7298_v60  ;;  %v5668_v9 = vpack.c.bf16 %v7300_v29, %v7303_v20  ;;  %v7323_v52 = vsub.f32 %v3204_v11, %v3306_v14  ;;  %v7330_v31 = vsub.f32 %v3250_v63, %v3360_v10 }
 0x71d   : > { %7914 = vst [vmem:[#allocation8_spill] sm:$0xff] %v7306_v37  ;;  %v3249_v30 = vpop.permute.xlu1 %3248  ;;  %v3211_v40 = vpop.permute.xlu0 %3210  ;;  %5605 = vmatprep.subr.bf16.mxu1 %v7306_v37  ;;  %v7321_v13 = vpack.c.bf16 %v7916_v21, %v7915_v4  ;;  %v3366_v37 = vand.u32 4294901760, %v3252_v16  ;;  %v7333_v32 = vpack.c.bf16 %v3363_v25, %v3360_v10  ;;  %v7918_v45 = vand.u32 4294901760, %v7214_v61 }
 0x71e   : > { %v7325_v60 = vpack.c.bf16 %v3309_v7, %v3306_v14  ;;  %v7327_v8 = vsub.f32 %v3205_v50, %v3309_v7  ;;  %v3253_v19 = vmul.f32 %v3249_v30, %v7908_v57  ;;  %5667 = vmatpush3.bf16.msra.mxu0 %v5666_v48  ;;  %v3216_v3 = vmul.f32 %v3211_v40, %v7912_v59 }
 0x71f   : > { %5669 = vmatprep.subr.bf16.mxu0 %v5668_v9  ;;  %7917 = vst [vmem:[#allocation5_spill] sm:$0xff] %v7333_v32  ;;  %v7338_v11 = vsub.f32 %v7214_v61, %v7918_v45  ;;  %v7340_v14 = vsub.f32 %v3215_v56, %v3315_v33  ;;  %v7345_v63 = vsub.f32 %v3214_v39, %v3312_v49  ;;  %v5946_v39 = vld [vmem:[%s7686_s8 + $0x8] ss:$0 sm:$0xff]  ;;  %v7921_v48 = vand.u32 4294901760, %v7195_v34 }
 0x720   : > { %v5670_v50 = vpack.c.bf16 %v7327_v8, %v7323_v52  ;;  %v3369_v57 = vand.u32 4294901760, %v3253_v19  ;;  %5607 = vmatpush3.bf16.msra.mxu1 %v7325_v60  ;;  %v3318_v7 = vand.u32 4294901760, %v3216_v3  ;;  %v5672_v30 = vpack.c.bf16 %v7312_v15, %v7330_v31 }
 0x721   : > { %v3213_v25 = vpop.permute.xlu1 %3212  ;;  %v3255_v10 = vpop.permute.xlu0 %3254  ;;  %5609 = vmatprep.subr.bf16.mxu1 %v7333_v32  ;;  %v7351_v56 = vpack.c.bf16 %v3315_v33, %v3312_v49  ;;  %v7361_v21 = vsub.f32 %v3252_v16, %v3366_v37  ;;  %v7367_v33 = vpack.c.bf16 %v3554_v0, %v7921_v48  ;;  %v7922_v49 = vand.u32 4294901760, %v7189_v12 }
 0x722   : > { %v7353_v40 = vsub.f32 %v3253_v19, %v3369_v57  ;;  %v3217_v9 = vmul.f32 %v3213_v25, %v7912_v59  ;;  %v7359_v4 = vmul.f32 %v5946_v39, %v3255_v10  ;;  %5671 = vmatpush3.bf16.msra.mxu0 %v5670_v50  ;;  %v7363_v45 = vpack.c.bf16 %v3369_v57, %v3366_v37 }
 0x723   : > { %7919 = vst [vmem:[#allocation9_spill] sm:$0xff] %v7351_v56  ;;  %5673 = vmatprep.subr.bf16.mxu0 %v5672_v30  ;;  %v7923_v59 = vand.u32 4294901760, %v7214_v61  ;;  %v5674_v25 = vpack.c.bf16 %v7340_v14, %v7345_v63  ;;  %v7924_v37 = vand.u32 4294901760, %v7220_v35  ;;  %v7384_v0 = vsub.f32 %v3216_v3, %v3318_v7 }
 0x724   : > { %7920 = vst [vmem:[#allocation6_spill] sm:$0xff] %v7363_v45  ;;  %v3321_v16 = vand.u32 4294901760, %v3217_v9  ;;  %v7779_v10 = vand.u32 4294901760, %v7359_v4  ;;  %5611 = vmatpush3.bf16.msra.mxu1 %v7351_v56  ;;  %v5676_v48 = vpack.c.bf16 %v7353_v40, %v7361_v21  ;;  %v3442_v3 = vand.u32 4294901760, %v7338_v11 }
 0x725   : > { %v7373_v19 = vpack.c.bf16 %v7923_v59, %v7922_v49  ;;  %v3427_v12 = vsub.f32 %v7220_v35, %v7924_v37  ;;  %v3257_v61 = vpop.permute.xlu1 %3256  ;;  %v3259_v57 = vpop.permute.xlu0 %3258  ;;  %5613 = vmatprep.subr.bf16.mxu1 %v7363_v45  ;;  %v7927_v11 = vand.u32 4294901760, %v7225_v23 }
 0x726   : > { %v7389_v30 = vpack.c.bf16 %v3321_v16, %v3318_v7  ;;  %v7391_v49 = vsub.f32 %v3217_v9, %v3321_v16  ;;  %v7396_v59 = vsub.f32 %v7359_v4, %v7779_v10  ;;  %v7398_v34 = vmul.f32 %v5946_v39, %v3257_v61  ;;  %5675 = vmatpush3.bf16.msra.mxu0 %v5674_v25 }
 0x727   : > { %v7403_v45 = vmul.f32 %v5946_v39, %v3259_v57  ;;  %5677 = vmatprep.subr.bf16.mxu0 %v5676_v48  ;;  %v7926_v7 = vand.u32 4294901760, %v7216_v5  ;;  %v7415_v25 = vsub.f32 %v7225_v23, %v7927_v11  ;;  %v7928_v57 = vand.u32 4294901760, %v7291_v28 }
 0x728   : > { %7925 = vst [vmem:[#allocation10_spill] sm:$0xff] %v7389_v30  ;;  %v5678_v16 = vpack.c.bf16 %v7391_v49, %v7384_v0  ;;  %5615 = vmatpush3.bf16.msra.mxu1 %v7389_v30  ;;  %v7787_v50 = vand.u32 4294901760, %v7396_v59  ;;  %v3428_v61 = vand.u32 4294901760, %v3427_v12  ;;  %v7929_v11 = vand.u32 4294901760, %v7398_v34 }
 0x729   : > { %v3420_v9 = vsub.f32 %v7216_v5, %v7926_v7  ;;  %v7420_v48 = vsub.f32 %v7291_v28, %v7928_v57  ;;  %v7786_v7 = vand.u32 4294901760, %v7403_v45  ;;  %v3261_v37 = vpop.permute.xlu1 %3260  ;;  %5617 = vmatprep.subr.bf16.mxu1 %v7045_v43  ;;  %v7930_v43 = vand.u32 4294901760, %v7170_v46 }
 0x72a   : > { %v7430_v56 = vsub.f32 %v7398_v34, %v7929_v11  ;;  %v7432_v32 = vmul.f32 %v5946_v39, %v3261_v37  ;;  %5679 = vmatpush3.bf16.msra.mxu0 %v5678_v16  ;;  %v7931_v12 = vand.u32 4294901760, %v7232_v17  ;;  %v7932_v11 = vand.u32 4294901760, %v7255_v24 }
 0x72b   : > { %v7438_v10 = vsub.f32 %v7403_v45, %v7786_v7  ;;  %5713 = vmatprep.subr.bf16.mxu0 %v7034_v18  ;;  %3382 = vmatmul.mubr.f32.vlgmr.msra.gmra.mrb[4].mxu1 %v7930_v43  ;;  %v3421_v37 = vand.u32 4294901760, %v3420_v9  ;;  %v7791_v16 = vand.u32 4294901760, %v7270_v36  ;;  %v7933_v7 = vand.u32 4294901760, %v7175_v47 }
 0x72c   : > { %v5626_v30 = vpack.c.bf16 %v3442_v3, %v7931_v12  ;;  %v3567_v39 = vsub.f32 %v7255_v24, %v7932_v11  ;;  %v7788_v57 = vand.u32 4294901760, %v7432_v32  ;;  %5619 = vmatpush3.bf16.msra.mxu1 %v7242_v1  ;;  %v7789_v18 = vand.u32 4294901760, %v7430_v56 }
 0x72d   : > { %3391 = vmatprep.mubr.f32.mxu1 %v7933_v7  ;;  %5621 = vmatprep.subr.bf16.mxu1 %v7062_v41  ;;  %v7934_v46 = vand.u32 4294901760, %v7253_v27  ;;  %v7935_v3 = vand.u32 4294901760, %v7263_v51  ;;  %v7790_v43 = vand.u32 4294901760, %v7438_v10  ;;  %v4286_v47 = vsub.f32 %v7396_v59, %v7787_v50 }
 0x72e   : > { %3774 = vmatmul.mubr.f32.vlgmr.msra.gmra.mrb[12].mxu0 %v7143_v53  ;;  %v7936_v1 = vand.u32 4294901760, %v7274_v54  ;;  %v7472_v7 = vsub.f32 %v7432_v32, %v7788_v57  ;;  %v5622_v12 = vpack.c.bf16 %v3428_v61, %v3421_v37  ;;  %v3575_v11 = vand.u32 4294901760, %v7415_v25 }
 0x72f   : > { %v3560_v17 = vsub.f32 %v7253_v27, %v7934_v46  ;;  %v3581_v9 = vsub.f32 %v7263_v51, %v7935_v3  ;;  %5715 = vmatpush3.bf16.msra.mxu0 %v7204_v62  ;;  %3780 = vmatprep.mubr.f32.mxu0 %v7146_v38  ;;  %v7937_v46 = vand.u32 4294901760, %v7284_v6  ;;  %v7793_v50 = vand.u32 4294901760, %v7300_v29 }
 0x730   : > { %v3455_v41 = vsub.f32 %v7274_v54, %v7936_v1  ;;  %5717 = vmatprep.subr.bf16.mxu0 %v7056_v42  ;;  %v3568_v1 = vand.u32 4294901760, %v3567_v39  ;;  %v7938_v57 = vand.u32 4294901760, %v7182_v2  ;;  %v4293_v62 = vsub.f32 %v7430_v56, %v7789_v18  ;;  %5623 = vmatpush3.bf16.msra.mxu1 %v5622_v12 }
 0x731   : > { %v7480_v3 = vsub.f32 %v7284_v6, %v7937_v46  ;;  %v3448_v61 = vsub.f32 %v7270_v36, %v7791_v16  ;;  %v7939_v25 = vand.u32 4294901760, %v7216_v5  ;;  %v7940_v37 = vand.u32 4294901760, %v7220_v35  ;;  %5625 = vmatprep.subr.bf16.mxu1 %v7367_v33 }
 0x732   : > { %3397 = vmatmul.mubr.f32.gmra.mrb[6].mxu1 %v7938_v57  ;;  %v7792_v42 = vand.u32 4294901760, %v7472_v7  ;;  %v4300_v2 = vsub.f32 %v7438_v10, %v7790_v43  ;;  %v3587_v57 = vand.u32 4294901760, %v7303_v20  ;;  %v3561_v39 = vand.u32 4294901760, %v3560_v17  ;;  %3783 = vmatmul.mubr.f32.gmra.mrb[14].mxu0 %v7149_v44 }
 0x733   : > { %v5718_v46 = vpack.c.bf16 %v7940_v37, %v7939_v25  ;;  %3627 = vmatprep.mubr.f32.mxu1 %v7087_v55  ;;  %v4287_v12 = vand.u32 4294901760, %v4286_v47  ;;  %v4294_v5 = vand.u32 4294901760, %v4293_v62  ;;  %v3456_v18 = vand.u32 4294901760, %v3455_v41  ;;  %4068 = vmatprep.mubr.f32.mxu0 %v7087_v55 }
 0x734   : > { %v3482_v35 = vand.u32 4294901760, %v7327_v8  ;;  %v3582_v25 = vand.u32 4294901760, %v3581_v9  ;;  %v4307_v37 = vsub.f32 %v7472_v7, %v7792_v42  ;;  %v3608_v43 = vand.u32 4294901760, %v7312_v15  ;;  %5627 = vmatpush3.bf16.msra.mxu1 %v5626_v30 }
 0x735   : > { %5719 = vmatpush3.bf16.msra.mxu0 %v5718_v46  ;;  %v5628_v33 = vpack.c.bf16 %v3568_v1, %v3561_v39  ;;  %v3595_v17 = vsub.f32 %v7300_v29, %v7793_v50  ;;  %v7514_v47 = vpack.c.bf16 %v4294_v5, %v4287_v12  ;;  %v3449_v41 = vand.u32 4294901760, %v3448_v61 }
 0x736   : > { %5721 = vmatprep.subr.bf16.mxu0 %v7321_v13  ;;  %v3475_v9 = vand.u32 4294901760, %v7323_v52  ;;  %v4301_v62 = vand.u32 4294901760, %v4300_v2  ;;  %v4308_v46 = vand.u32 4294901760, %v4307_v37  ;;  %v3470_v16 = vand.u32 4294901760, %v7480_v3 }
 0x737   : > { %v3601_v42 = vand.u32 4294901760, %v7330_v31  ;;  %5629 = vmatprep.subr.bf16.mxu1 %v5628_v33  ;;  %v7941_v13 = vand.u32 4294901760, %v7253_v27  ;;  %v7942_v1 = vand.u32 4294901760, %v7255_v24  ;;  %v3588_v50 = vsub.f32 %v7303_v20, %v3587_v57 }
 0x738   : > { %v3496_v12 = vand.u32 4294901760, %v7340_v14  ;;  %v3483_v30 = vsub.f32 %v7327_v8, %v3482_v35  ;;  %v5630_v61 = vpack.c.bf16 %v3456_v18, %v3449_v41  ;;  %v7529_v3 = vpack.c.bf16 %v4308_v46, %v4301_v62 }
 0x739   : > { %v5724_v39 = vpack.c.bf16 %v7942_v1, %v7941_v13  ;;  %5723 = vmatpush3.bf16.msra.mxu0 %v7373_v19  ;;  %v3622_v2 = vand.u32 4294901760, %v7353_v40  ;;  %v5632_v27 = vpack.c.bf16 %v3582_v25, %v3575_v11  ;;  %v3596_v5 = vand.u32 4294901760, %v3595_v17 }
 0x73a   : > { %v3609_v24 = vsub.f32 %v7312_v15, %v3608_v43  ;;  %v3463_v20 = vand.u32 4294901760, %v7420_v48  ;;  %v3489_v37 = vand.u32 4294901760, %v7345_v63  ;;  %v3476_v33 = vsub.f32 %v7323_v52, %v3475_v9  ;;  %5631 = vmatpush3.bf16.msra.mxu1 %v5630_v61  ;;  %v3169_v15 = vld [vmem:[%s7685_s7 + $0x28] sm:$0xff] }
 0x73b   : > { %5725 = vmatprep.subr.bf16.mxu0 %v5724_v39  ;;  %v7943_v19 = vand.u32 4294901760, %v7270_v36  ;;  %v7944_v18 = vand.u32 4294901760, %v7274_v54  ;;  %v3615_v62 = vand.u32 4294901760, %v7361_v21  ;;  %5633 = vmatprep.subr.bf16.mxu1 %v5632_v27  ;;  %v7945_v11 = vand.u32 4294901760, %v7225_v23 }
 0x73c   : > { %v7946_v25 = vand.u32 4294901760, %v7263_v51  ;;  %v3589_v46 = vand.u32 4294901760, %v3588_v50  ;;  %v3602_v48 = vsub.f32 %v7330_v31, %v3601_v42  ;;  %v3497_v13 = vsub.f32 %v7340_v14, %v3496_v12 }
 0x73d   : > { %v5726_v41 = vpack.c.bf16 %v7944_v18, %v7943_v19  ;;  %v3484_v52 = vand.u32 4294901760, %v3483_v30  ;;  %v3510_v1 = vand.u32 4294901760, %v7391_v49  ;;  %v5634_v36 = vpack.c.bf16 %v3470_v16, %v3463_v20 }
 0x73e   : > { %v5728_v17 = vpack.c.bf16 %v7946_v25, %v7945_v11  ;;  %v5636_v54 = vpack.c.bf16 %v3596_v5, %v3589_v46  ;;  %v3610_v39 = vand.u32 4294901760, %v3609_v24  ;;  %v3623_v61 = vsub.f32 %v7353_v40, %v3622_v2 }
 0x73f   : > { %5727 = vmatpush3.bf16.msra.mxu0 %v5726_v41  ;;  %v3490_v23 = vsub.f32 %v7345_v63, %v3489_v37  ;;  %v3477_v27 = vand.u32 4294901760, %v3476_v33  ;;  %v3503_v51 = vand.u32 4294901760, %v7384_v0  ;;  %5635 = vmatpush3.bf16.msra.mxu1 %v5634_v36  ;;  %v7947_v31 = vand.u32 4294901760, %v7291_v28 }
 0x740   : > { %5729 = vmatprep.subr.bf16.mxu0 %v5728_v17  ;;  %v7948_v14 = vand.u32 4294901760, %v7284_v6  ;;  %5637 = vmatprep.subr.bf16.mxu1 %v5636_v54  ;;  %v7949_v30 = vand.u32 4294901760, %v7300_v29  ;;  %v3603_v20 = vand.u32 4294901760, %v3602_v48  ;;  %v3616_v5 = vsub.f32 %v7361_v21, %v3615_v62 }
 0x741   : > { %v3498_v24 = vand.u32 4294901760, %v3497_v13  ;;  %v3511_v40 = vsub.f32 %v7391_v49, %v3510_v1  ;;  %v5638_v63 = vpack.c.bf16 %v3484_v52, %v3477_v27  ;;  %v3624_v19 = vand.u32 4294901760, %v3623_v61  ;;  %v7952_v13 = vld [vmem:[#allocation14_spill] sm:$0xff]  ;;  %v7953_v52 = vld [vmem:[#allocation11_spill] sm:$0xff] }
 0x742   : > { %v5730_v50 = vpack.c.bf16 %v7948_v14, %v7947_v31  ;;  %v5732_v16 = vpack.c.bf16 %v7949_v30, %v3587_v57  ;;  %v5640_v33 = vpack.c.bf16 %v3610_v39, %v3603_v20  ;;  %v3491_v18 = vand.u32 4294901760, %v3490_v23  ;;  %v7958_v23 = vld [vmem:[#allocation15_spill] sm:$0xff]  ;;  %v7963_v30 = vld [vmem:[#allocation17_spill] sm:$0xff] }
 0x743   : > { %v3504_v28 = vsub.f32 %v7384_v0, %v3503_v51  ;;  %5639 = vmatpush3.bf16.msra.mxu1 %v5638_v63  ;;  %v5734_v6 = vpack.c.bf16 %v3482_v35, %v3475_v9  ;;  %v5736_v29 = vpack.c.bf16 %v3608_v43, %v3601_v42  ;;  %v3617_v21 = vand.u32 4294901760, %v3616_v5  ;;  %v3166_v0 = vld [vmem:[%s7685_s7 + $0x10] sm:$0xff]  ;;  %v7959_v31 = vld [vmem:[#allocation3_spill] sm:$0xff] }
 0x744   : > { %5731 = vmatpush3.bf16.msra.mxu0 %v5730_v50  ;;  %5641 = vmatprep.subr.bf16.mxu1 %v5640_v33  ;;  %v3512_v57 = vand.u32 4294901760, %v3511_v40  ;;  %v5642_v49 = vpack.c.bf16 %v3498_v24, %v3491_v18  ;;  %v5738_v25 = vpack.c.bf16 %v3496_v12, %v3489_v37  ;;  %v5740_v8 = vpack.c.bf16 %v3622_v2, %v3615_v62  ;;  %v7950_v2 = vld [vmem:[#allocation13_spill] sm:$0xff]  ;;  %v7951_v62 = vld [vmem:[#allocation18_spill] sm:$0xff]  ;;  %v7962_v50 = vld [vmem:[#allocation16_spill] sm:$0xff] }
 0x745   : > { %5733 = vmatprep.subr.bf16.mxu0 %v5732_v16  ;;  %v5644_v41 = vpack.c.bf16 %v3624_v19, %v3617_v21  ;;  %v3505_v11 = vand.u32 4294901760, %v3504_v28  ;;  %v3270_v43 = vsel %vm3268_vm6, %v3166_v0, 0  ;;  %v5742_v42 = vpack.c.bf16 %v3510_v1, %v3503_v51  ;;  %v7954_v1 = vld [vmem:[#allocation12_spill] sm:$0xff]  ;;  %v7964_v16 = vld [vmem:[#allocation19_spill] sm:$0xff]  ;;  %v7973_v18 = vld [vmem:[#allocation6_spill] sm:$0xff] }
 0x746   : > { %v5792_v9 = vpack.c.bf16 %v7430_v56, %v7396_v59  ;;  %v3273_v12 = vsel %vm3268_vm6, %v3169_v15, 0  ;;  %v7575_v37 = vand.u32 4294901760, %v3270_v43  ;;  %v5796_v17 = vpack.c.bf16 %v7472_v7, %v7438_v10  ;;  %v7968_v40 = vld [vmem:[#allocation8_spill] sm:$0xff] }
 0x747   : > { %5643 = vmatpush3.bf16.msra.mxu1 %v5642_v49  ;;  %v5646_v35 = vpack.c.bf16 %v3512_v57, %v3505_v11  ;;  %v7584_v46 = vand.u32 4294901760, %v3273_v12  ;;  %v7955_v36 = vand.u32 4294901760, %v7954_v1  ;;  %v7956_v54 = vand.u32 4294901760, %v7359_v4 }
 0x748   : > { %5735 = vmatpush3.bf16.msra.mxu0 %v5734_v6  ;;  %5645 = vmatprep.subr.bf16.mxu1 %v5644_v41  ;;  %v7588_v48 = vsub.f32 %v3270_v43, %v7575_v37  ;;  %v7957_v39 = vand.u32 4294901760, %v7398_v34  ;;  %v7960_v4 = vand.u32 4294901760, %v7403_v45  ;;  %v7961_v34 = vand.u32 4294901760, %v7432_v32  ;;  %v7967_v32 = vld [vmem:[#allocation4_spill] sm:$0xff] }
 0x749   : > { %5737 = vmatprep.subr.bf16.mxu0 %v5736_v29  ;;  %v4273_v27 = vsub.f32 %v3273_v12, %v7584_v46  ;;  %v7965_v20 = vand.u32 4294901760, %v7396_v59  ;;  %v7966_v5 = vand.u32 4294901760, %v7430_v56  ;;  %v7969_v63 = vand.u32 4294901760, %v7438_v10  ;;  %v7971_v56 = vld [vmem:[#allocation5_spill] sm:$0xff]  ;;  %v7974_v10 = vld [vmem:[#allocation10_spill] sm:$0xff] }
 0x74a   : > { %v7598_v61 = vpack.c.bf16 %v7957_v39, %v7956_v54  ;;  %v4264_v51 = vand.u32 4294901760, %v7588_v48  ;;  %v5780_v14 = vpack.c.bf16 %v7961_v34, %v7960_v4  ;;  %v7970_v33 = vand.u32 4294901760, %v7472_v7  ;;  %v7972_v59 = vld [vmem:[#allocation9_spill] sm:$0xff] }
 0x74b   : > { %5647 = vmatpush3.bf16.msra.mxu1 %v5646_v35  ;;  %v5808_v24 = vpack.c.bf16 %v7966_v5, %v7965_v20  ;;  %v4274_v45 = vand.u32 4294901760, %v4273_v27  ;;  %v7975_v7 = vand.u32 4294901760, %v7143_v53  ;;  %v7976_v28 = vand.u32 4294901760, %v7146_v38 }
 0x74c   : > { %5739 = vmatpush3.bf16.msra.mxu0 %v5738_v25  ;;  %5681 = vmatprep.subr.bf16.mxu1 %v7020_v26  ;;  %v5812_v19 = vpack.c.bf16 %v7970_v33, %v7969_v63  ;;  %v7977_v6 = vand.u32 4294901760, %v7149_v44  ;;  %v3267_v0 = vstv %s3266_s19 }
 0x74d   : > { %5741 = vmatprep.subr.bf16.mxu0 %v5740_v8 }
 0x74e   : > { %3629 = vmatmul.mubr.f32.vlgmr.msra.gmra.mrb[8].mxu1 %v7132_v22 }
 0x74f   : > { %5683 = vmatpush3.bf16.msra.mxu1 %v7115_v58  ;;  %3634 = vmatprep.mubr.f32.mxu1 %v7950_v2 }
 0x750   : > { %5743 = vmatpush3.bf16.msra.mxu0 %v5742_v42  ;;  %5685 = vmatprep.subr.bf16.mxu1 %v7951_v62 }
 0x751   : > { %5793 = vmatprep.subr.bf16.mxu0 %v5792_v9 }
 0x752   : > { %3636 = vmatmul.mubr.f32.gmra.mrb[10].mxu1 %v7952_v13 }
 0x753   : > { %4070 = vmatmul.mubr.f32.vlgmr.msra.gmra.mrb[16].mxu0 %v7132_v22  ;;  %5687 = vmatpush3.bf16.msra.mxu1 %v7953_v52 }
 0x754   : > { %5795 = vmatpush3.bf16.msra.mxu0 %v5792_v9  ;;  %4075 = vmatprep.mubr.f32.mxu0 %v7950_v2 }
 0x755   : > { %5797 = vmatprep.subr.bf16.mxu0 %v5796_v17  ;;  %3887 = vmatprep.mubr.f32.mxu1 %v7955_v36 }
 0x756   : > { %5689 = vmatprep.subr.bf16.mxu1 %v7958_v23 }
 0x757   : > { %4077 = vmatmul.mubr.f32.gmra.mrb[18].mxu0 %v7952_v13  ;;  %5691 = vmatpush3.bf16.msra.mxu1 %v7959_v31 }
 0x758   : > { %5799 = vmatpush3.bf16.msra.mxu0 %v5796_v17  ;;  %5200 = vmatprep.mubr.f32.mxu0 %v7588_v48 }
 0x759   : > { %5801 = vmatprep.subr.bf16.mxu0 %v7598_v61  ;;  %5693 = vmatprep.subr.bf16.mxu1 %v7962_v50 }
 0x75b   : > { %5201 = vmatmul.mubr.f32.vlgmr.msra.gmra.mrb[20].mxu0 %v4273_v27  ;;  %5695 = vmatpush3.bf16.msra.mxu1 %v7963_v30 }
 0x75c   : > { %5803 = vmatpush3.bf16.msra.mxu0 %v7598_v61  ;;  %5211 = vmatprep.mubr.f32.mxu0 %v4264_v51 }
 0x75d   : > { %5805 = vmatprep.subr.bf16.mxu0 %v5780_v14  ;;  %5697 = vmatprep.subr.bf16.mxu1 %v7964_v16 }
 0x75f   : > { %5699 = vmatpush3.bf16.msra.mxu1 %v7967_v32 }
 0x760   : > { %5807 = vmatpush3.bf16.msra.mxu0 %v5780_v14  ;;  %5701 = vmatprep.subr.bf16.mxu1 %v7968_v40 }
 0x761   : > { %5809 = vmatprep.subr.bf16.mxu0 %v5808_v24 }
 0x763   : > { %5212 = vmatmul.mubr.f32.vlgmr.msra.gmra.mrb[20].mxu0 %v4274_v45  ;;  %5703 = vmatpush3.bf16.msra.mxu1 %v7325_v60 }
 0x764   : > { %5811 = vmatpush3.bf16.msra.mxu0 %v5808_v24  ;;  %5222 = vmatprep.mubr.f32.mxu0 %v7575_v37 }
 0x765   : > { %5813 = vmatprep.subr.bf16.mxu0 %v5812_v19  ;;  %5705 = vmatprep.subr.bf16.mxu1 %v7971_v56 }
 0x767   : > { %5707 = vmatpush3.bf16.msra.mxu1 %v7972_v59 }
 0x768   : > { %5815 = vmatpush3.bf16.msra.mxu0 %v5812_v19  ;;  %5709 = vmatprep.subr.bf16.mxu1 %v7973_v18 }
 0x769   : > { %5817 = vmatprep.subr.bf16.mxu0 %v7598_v61 }
 0x76b   : > { %5223 = vmatmul.mubr.f32.vlgmr.msra.gmra.mrb[20].mxu0 %v7584_v46  ;;  %5711 = vmatpush3.bf16.msra.mxu1 %v7974_v10 }
 0x76c   : > { %5819 = vmatpush3.bf16.msra.mxu0 %v7598_v61  ;;  %5233 = vmatprep.mubr.f32.mxu0 %v7575_v37 }
 0x76d   : > { %5821 = vmatprep.subr.bf16.mxu0 %v5780_v14  ;;  %5745 = vmatprep.subr.bf16.mxu1 %v7020_v26  ;;  %v4265_v26 = vsub.f32 %v7588_v48, %v4264_v51 }
 0x76e   : > { %3891 = vmatmul.mubr.f32.vlgmr.msra.gmra.mrb[12].mxu1 %v7975_v7 }
 0x76f   : > { %5747 = vmatpush3.bf16.msra.mxu1 %v7115_v58  ;;  %3898 = vmatprep.mubr.f32.mxu1 %v7976_v28  ;;  %v4266_v58 = vand.u32 4294901760, %v4265_v26 }
 0x770   : > { %5823 = vmatpush3.bf16.msra.mxu0 %v5780_v14  ;;  %5749 = vmatprep.subr.bf16.mxu1 %v7951_v62 }
 0x772   : > { %3902 = vmatmul.mubr.f32.gmra.mrb[14].mxu1 %v7977_v6 }
 0x773   : > { %5234 = vmatmul.mubr.f32.vlgmr.msra.gmra.mrb[20].mxu0 %v7584_v46  ;;  %5751 = vmatpush3.bf16.msra.mxu1 %v7953_v52 }
 0x774   : > { %4179 = vmatprep.mubr.f32.mxu1 %v7087_v55  ;;  %5753 = vmatprep.subr.bf16.mxu1 %v7958_v23  ;;  %v4275_v55 = vsub.f32 %v4273_v27, %v4274_v45 }
 0x776   : > { %v4276_v53 = vand.u32 4294901760, %v4275_v55 }
 0x777   : > { %5755 = vmatpush3.bf16.msra.mxu1 %v7959_v31 }
 0x778   : > { %5757 = vmatprep.subr.bf16.mxu1 %v7962_v50 }
 0x77b   : > { %5759 = vmatpush3.bf16.msra.mxu1 %v7963_v30 }
 0x77c   : > { %5761 = vmatprep.subr.bf16.mxu1 %v7964_v16 }
 0x77f   : > { %5763 = vmatpush3.bf16.msra.mxu1 %v7967_v32 }
 0x780   : > { %5765 = vmatprep.subr.bf16.mxu1 %v7968_v40 }
 0x783   : > { %5767 = vmatpush3.bf16.msra.mxu1 %v7325_v60 }
 0x784   : > { %5769 = vmatprep.subr.bf16.mxu1 %v7971_v56 }
 0x787   : > { %5771 = vmatpush3.bf16.msra.mxu1 %v7972_v59 }
 0x788   : > { %5773 = vmatprep.subr.bf16.mxu1 %v7973_v18 }
 0x78b   : > { %5775 = vmatpush3.bf16.msra.mxu1 %v7974_v10 }
 0x78c   : > { %5777 = vmatprep.subr.bf16.mxu1 %v7598_v61 }
 0x78e   : > { %4181 = vmatmul.mubr.f32.vlgmr.msra.gmra.mrb[16].mxu1 %v7132_v22 }
 0x78f   : > { %5779 = vmatpush3.bf16.msra.mxu1 %v7598_v61  ;;  %4186 = vmatprep.mubr.f32.mxu1 %v7950_v2 }
 0x790   : > { %5781 = vmatprep.subr.bf16.mxu1 %v5780_v14 }
 0x792   : > { %4188 = vmatmul.mubr.f32.gmra.mrb[18].mxu1 %v7952_v13 }
 0x793   : > { %5783 = vmatpush3.bf16.msra.mxu1 %v5780_v14  ;;  %5178 = vmatprep.mubr.f32.mxu1 %v4266_v58 }
 0x794   : > { %5785 = vmatprep.subr.bf16.mxu1 %v7514_v47 }
 0x796   : > { %5179 = vmatmul.mubr.f32.vlgmr.msra.gmra.mrb[20].mxu1 %v4276_v53 }
 0x797   : > { %5787 = vmatpush3.bf16.msra.mxu1 %v7514_v47  ;;  %5189 = vmatprep.mubr.f32.mxu1 %v7575_v37 }
 0x798   : > { %5789 = vmatprep.subr.bf16.mxu1 %v7529_v3 }
 0x79b   : > { %5791 = vmatpush3.bf16.msra.mxu1 %v7529_v3 }
 0x79e   : > { %5190 = vmatmul.mubr.f32.vlgmr.msra.gmra.mrb[20].mxu1 %v7584_v46 }
 0x7fe   : > { %v4866_v22 = vpop.f32.mrb[4].mxu1 }
 0x7ff   : > { %v4867_v38 = vpop.f32.mrb[5].mxu1 }
 0x800   : > { %v4868_v44 = vadd.f32 %v4867_v38, %v4866_v22 }
 0x801   : > { %v4942_v60 = vpop.f32.mrb[12].mxu0 }
 0x802   : > { %v4943_v29 = vpop.f32.mrb[13].mxu0  ;;  %v3384_v15 = vadd.f32 %v4868_v44, %v3267_v0 }
 0x803   : > { %v4944_v57 = vadd.f32 %v4943_v29, %v4942_v60 }
 0x805   : > { %v4869_v21 = vpop.f32.mrb[6].mxu1  ;;  %v4945_v11 = vpop.f32.mrb[14].mxu0 }
 0x806   : > { %v4870_v49 = vpop.f32.mrb[7].mxu1  ;;  %v4946_v25 = vpop.f32.mrb[15].mxu0 }
 0x807   : > { %v4871_v41 = vadd.f32 %v4870_v49, %v4869_v21  ;;  %v4947_v47 = vadd.f32 %v4946_v25, %v4945_v11 }
 0x809   : > { %v3399_v62 = vadd.f32 %v4871_v41, %v3267_v0 }
 0x821   : > { %v4904_v8 = vpop.f32.mrb[8].mxu1 }
 0x822   : > { %v4905_v35 = vpop.f32.mrb[9].mxu1 }
 0x823   : > { %v4906_v3 = vadd.f32 %v4905_v35, %v4904_v8 }
 0x825   : > { %v3631_v9 = vadd.f32 %v4906_v3, %v3384_v15  ;;  %v4907_v12 = vpop.f32.mrb[10].mxu1 }
 0x826   : > { %v5018_v43 = vpop.f32.mrb[16].mxu0  ;;  %v4908_v2 = vpop.f32.mrb[11].mxu1 }
 0x827   : > { %v5019_v42 = vpop.f32.mrb[17].mxu0  ;;  %v3776_v17 = vadd.f32 %v4944_v57, %v3631_v9  ;;  %v4909_v46 = vadd.f32 %v4908_v2, %v4907_v12 }
 0x828   : > { %v5020_v37 = vadd.f32 %v5019_v42, %v5018_v43 }
 0x829   : > { %v3638_v52 = vadd.f32 %v4909_v46, %v3399_v62 }
 0x82a   : > { %v5021_v48 = vpop.f32.mrb[18].mxu0 }
 0x82b   : > { %v5022_v13 = vpop.f32.mrb[19].mxu0  ;;  %v3785_v36 = vadd.f32 %v4947_v47, %v3638_v52 }
 0x82c   : > { %v5023_v1 = vadd.f32 %v5022_v13, %v5021_v48 }
 0x841   : > { %v4980_v54 = vpop.f32.mrb[12].mxu1 }
 0x842   : > { %v4981_v39 = vpop.f32.mrb[13].mxu1 }
 0x843   : > { %v4982_v61 = vadd.f32 %v4981_v39, %v4980_v54 }
 0x845   : > { %v3893_v51 = vadd.f32 %v4982_v61, %v3776_v17  ;;  %v4983_v31 = vpop.f32.mrb[14].mxu1 }
 0x846   : > { %v5235_v23 = vpop.f32.mrb[20].mxu0  ;;  %v4984_v4 = vpop.f32.mrb[15].mxu1 }
 0x847   : > { %v4711_v27 = vpop.f32.mrb[21].mxu0  ;;  %v4072_v34 = vadd.f32 %v5020_v37, %v3893_v51  ;;  %v4985_v14 = vadd.f32 %v4984_v4, %v4983_v31 }
 0x849   : > { %v3904_v50 = vadd.f32 %v4985_v14, %v3785_v36 }
 0x84b   : > { %v4079_v30 = vadd.f32 %v5023_v1, %v3904_v50 }
 0x861   : > { %v5056_v16 = vpop.f32.mrb[16].mxu1 }
 0x862   : > { %v5057_v20 = vpop.f32.mrb[17].mxu1 }
 0x863   : > { %v5058_v5 = vadd.f32 %v5057_v20, %v5056_v16 }
 0x865   : > { %v5059_v24 = vpop.f32.mrb[18].mxu1  ;;  %v4183_v45 = vadd.f32 %v5058_v5, %v4072_v34 }
 0x866   : > { %v5060_v32 = vpop.f32.mrb[19].mxu1 }
 0x867   : > { %v5061_v40 = vadd.f32 %v5060_v32, %v5059_v24 }
 0x869   : > { %v4190_v63 = vadd.f32 %v5061_v40, %v4079_v30 }
 0x871   : > { %v5191_v33 = vpop.f32.mrb[20].mxu1 }
 0x872   : > { %v5830_v19 = vadd.f32 %v5191_v33, %v4190_v63  ;;  %v4369_v56 = vpop.f32.mrb[21].mxu1 }
 0x873   : > { %v5832_v59 = vadd.f32 %v4369_v56, %v4183_v45 }
 0x874   : > { %v5831_v18 = vadd.f32 %v5830_v19, %v5235_v23 }
 0x875   : > { %v5833_v10 = vadd.f32 %v5832_v59, %v4711_v27 }
 0x876   : > { %5942 = vtanh.f32 %v5831_v18 }
 0x877   : > { %5944 = vtanh.f32 %v5833_v10 }
 0x880   : > { %v5943_v7 = vpop.eup %5942 }
 0x881   : > { %v5945_v28 = vpop.eup %5944  ;;  %4724 = vst [vmem:[%s357_s23 + $0x8] sm:$0xff] %v5943_v7 }
 0x882   : > { %4723 = vst [vmem:[%s357_s23] sm:$0xff] %v5945_v28 }
 0x883 PF: > { %s21_s15 = sadd.s32 1, %s5953_s15  }
 0x884   : > { %p18_p4 = scmp.ge.s32.totalorder %s21_s15, 4  }
 0x886   :  { %20 = sbr.rel (!%p18_p4) target bundleno = 2 (0x2), region = 90 }

</bundles_post_ra>
